<compile_context>
chip_gen: v6e
topology: v6e:2x2x1
jax: 0.10.0
libtpu: 0.0.40
codegen_flags: <defaults>
</compile_context>

<pallas_src>
import functools

import jax
import jax.numpy as jnp
import numpy as np
from jax.experimental import pallas as pl
from jax.experimental.pallas import tpu as pltpu

FINAL_CONV_DIM = (512, 512)  # hard-coded inside the original torch `conv`


def _conv_offsets(Hx, Wx, kh, kw):
    """Row/col shifts equivalent to torch conv()'s pad -> conv2d -> center crop.

    y[p, q] = sum_{b,c} h[b, c] * x[p + dr[b], q + dc[c]]   (zero outside x)
    """
    p0 = FINAL_CONV_DIM[0] - (Hx - kh + 1)   # torch padding[0] (applied to W)
    p1 = FINAL_CONV_DIM[1] - (Wx - kw + 1)   # torch padding[1] (applied to H)
    l_left, l_top = p0 // 2, p1 // 2
    starti = (FINAL_CONV_DIM[0] - Hx) // 2
    startj = (FINAL_CONV_DIM[1] - Wx) // 2
    dr = [starti + (kh - 1 - b) - l_top for b in range(kh)]
    dc = [startj + (kw - 1 - c) - l_left for c in range(kw)]
    return dr, dc


def _round_up(x, m):
    return ((x + m - 1) // m) * m


def _packed_shift_conv(pad_val, h_at, laneq, dr, dc, TS, LS, H, W, GW):
    """sum_{b,c} h(b,c) * shifted slice of the packed zero-bordered image slab.

    G images are packed along lanes (each owns W lanes).  Column shifts are a
    single lane-realigning slice per column offset; a per-offset lane mask
    zeroes the lanes whose within-image column would fall outside [0, W) so a
    shift never bleeds data from the neighbouring packed image.
    """
    kh, kw = len(dr), len(dc)
    col_accs = []
    for c in range(kw):
        s = dc[c]
        colv = pad_val[:, :, LS + s:LS + s + GW]      # one lane realign / col
        if s != 0:
            keep = jnp.logical_and(laneq + s >= 0, laneq + s <= W - 1)
            colv = jnp.where(keep, colv, 0.0)
        r0 = TS + dr[0]
        acc = h_at(0, c) * colv[:, r0:r0 + H, :]
        for b in range(1, kh):
            r0 = TS + dr[b]
            acc = acc + h_at(b, c) * colv[:, r0:r0 + H, :]
        col_accs.append(acc)
    total = col_accs[0]
    for t in col_accs[1:]:
        total = total + t
    return total


def _t_layer_kernel(h_ref, c_ref, xt_ref, y_ref, dtr_ref, ddr_ref, ddl_ref,
                    dtl_ref, out_ref, pad_ref, *,
                    dr, dc, TS, LS, H, W, GW, TBg, K, lr, tau):
    kh, kw = len(dr), len(dc)
    f32 = jnp.float32
    hp = jax.lax.Precision.HIGHEST
    Hp, Wt = pad_ref.shape[1], pad_ref.shape[2]

    # ---- keep only the conv border ROWS zero (megacore-safe: every step) ----
    # The data region is fully overwritten below; slack columns only ever feed
    # masked lanes, so they never need zeroing.
    off_r = max(0, -min(dr))
    er = max(0, max(dr))
    if off_r > 0:
        pad_ref[:, TS - off_r:TS, :] = jnp.zeros((TBg, off_r, Wt), f32)
    if er > 0:
        pad_ref[:, TS + H:TS + H + er, :] = jnp.zeros((TBg, er, Wt), f32)

    # lane -> within-image column index (G images per 128-lane group)
    laneq = jax.lax.broadcasted_iota(jnp.int32, (1, 1, GW), 2) % W

    # ---- a = conv(h, xt) - y -------------------------------------------------
    pad_ref[:, TS:TS + H, LS:LS + GW] = xt_ref[...]
    xp = pad_ref[...]
    conv1 = _packed_shift_conv(xp, lambda b, c: h_ref[b, c],
                               laneq, dr, dc, TS, LS, H, W, GW)
    a = conv1 - y_ref[...]

    # ---- conv(h_flip, a): reuse the same scratch (border rows still zero) ----
    pad_ref[:, TS:TS + H, LS:LS + GW] = a
    ap = pad_ref[...]
    conv2 = _packed_shift_conv(ap, lambda b, c: h_ref[kh - 1 - b, kw - 1 - c],
                               laneq, dr, dc, TS, LS, H, W, GW)

    b_img = xt_ref[...] - lr * conv2                        # (TBg, H, GW)
    bf = b_img.reshape(TBg * H, GW)

    # ---- u = D b D^T : two single wide MXU matmuls (block-diag operators) ----
    p = jnp.dot(bf, dtr_ref[...], precision=hp, preferred_element_type=f32)
    u = jnp.dot(ddl_ref[...], p, precision=hp, preferred_element_type=f32)

    # ---- rho(u): one exp + Horner in e = exp(-u^2 / (2 tau^2)) ---------------
    e1 = jnp.exp(-(u * u) * (1.0 / (2.0 * tau * tau)))
    poly = c_ref[K - 1]
    for k in range(K - 2, -1, -1):
        poly = poly * e1 + c_ref[k]
    r = u * poly                                            # rho(u)

    # ---- xt1 = D^T rho(u) D : two more single wide matmuls -------------------
    t = jnp.dot(r, ddr_ref[...], precision=hp, preferred_element_type=f32)
    xt1 = jnp.dot(dtl_ref[...], t, precision=hp, preferred_element_type=f32)
    out_ref[...] = xt1.reshape(TBg, H, GW)


def _vmem_estimate(TBg, H, GW, Hp, Wt, itemsize=4):
    blk = TBg * H * GW * itemsize
    io = 3 * 2 * blk                                          # xt/y/out, 2-buf
    scratch = TBg * _round_up(Hp, 8) * _round_up(Wt, 128) * itemsize
    temps = 10 * blk                                          # live f32 temps
    mats = 2 * (2 * GW * GW + 2 * (TBg * H) ** 2) * itemsize  # block-diag D ops
    return io + scratch + temps + mats


def _pick_tbg(Ng, H, GW, Hp, Wt, G, max_images=128, budget_bytes=24 << 20):
    """Largest image-group tile (<= max_images images) fitting the VMEM budget."""
    tbg = max(1, min(Ng, max(1, max_images // G)))
    while tbg > 1 and _vmem_estimate(tbg, H, GW, Hp, Wt) > budget_bytes:
        tbg -= 1
    return tbg


def t_layer_forward(y, xt, D, h, param, learning_rate, max_images_per_step=128):
    c, tau = param
    N, C, H, W = xt.shape
    assert C == 1, "this deconvolution layer uses single-channel images"
    assert H == W and D.shape[-2:] == (H, H), (
        "validated for square images with a square D (as in the torch model)")
    kh, kw = h.shape[2], h.shape[3]

    dr, dc = _conv_offsets(H, W, kh, kw)
    off_r, er = max(0, -min(dr)), max(0, max(dr))
    off_c, ec = max(0, -min(dc)), max(0, max(dc))
    TS = _round_up(off_r, 8) if off_r > 0 else 0      # sublane-aligned data rows
    LS = _round_up(off_c, 128) if off_c > 0 else 0    # lane-aligned data columns

    G = max(1, 128 // W)                              # images packed per lane group
    GW = G * W
    Hp = TS + H + er
    Wt = LS + GW + ec

    xt2 = xt[:, 0].astype(jnp.float32)
    y2 = y[:, 0].astype(jnp.float32)
    h2 = h[0, 0].astype(jnp.float32)
    D2 = D[0, 0].astype(jnp.float32)
    c1 = jnp.asarray(c, jnp.float32).reshape(-1)
    K = int(c1.shape[0])
    tau = float(tau)
    lr = float(learning_rate)

    Ng = -(-N // G)                                   # image groups (ceil)
    TBg = _pick_tbg(Ng, H, GW, Hp, Wt, G, max_images=max_images_per_step)
    n_steps = -(-Ng // TBg)
    if n_steps == 1 and Ng > 1:                       # keep >=2 steps for v7x
        TBg = -(-Ng // 2)
        n_steps = -(-Ng // TBg)
    Ng_pad = n_steps * TBg
    Npad = Ng_pad * G

    def pack(a):   # (N,H,W) -> (Ng_pad, H, G*W): G images side-by-side on lanes
        a = jnp.pad(a, ((0, Npad - N), (0, 0), (0, 0)))
        return a.reshape(Ng_pad, G, H, W).transpose(0, 2, 1, 3).reshape(
            Ng_pad, H, GW)

    xt_p, y_p = pack(xt2), pack(y2)

    # Block-diagonal D operators built once in the wrapper (no in-kernel D.T):
    #   right-multiplies act per packed image (lane blocks), left-multiplies
    #   act per image-group row block -> each D multiply is ONE wide matmul.
    eyeG = jnp.eye(G, dtype=jnp.float32)
    eyeB = jnp.eye(TBg, dtype=jnp.float32)
    DTr = jnp.kron(eyeG, D2.T)                        # (GW, GW)
    DDr = jnp.kron(eyeG, D2)                          # (GW, GW)
    DDl = jnp.kron(eyeB, D2)                          # (TBg*H, TBg*H)
    DTl = jnp.kron(eyeB, D2.T)                        # (TBg*H, TBg*H)

    img_spec = pl.BlockSpec((TBg, H, GW), lambda n: (n, 0, 0))
    rmat_spec = pl.BlockSpec((GW, GW), lambda n: (0, 0))
    lmat_spec = pl.BlockSpec((TBg * H, TBg * H), lambda n: (0, 0))
    smem_spec = pl.BlockSpec(memory_space=pltpu.MemorySpace.SMEM)

    kernel = functools.partial(
        _t_layer_kernel, dr=dr, dc=dc, TS=TS, LS=LS,
        H=H, W=W, GW=GW, TBg=TBg, K=K, lr=lr, tau=tau)

    vmem_limit = int(min(48 << 20,
                         max(16 << 20, 3 * _vmem_estimate(TBg, H, GW, Hp, Wt))))

    out_p = pl.pallas_call(
        kernel,
        out_shape=jax.ShapeDtypeStruct((Ng_pad, H, GW), jnp.float32),
        grid=(n_steps,),
        in_specs=[smem_spec, smem_spec, img_spec, img_spec,
                  rmat_spec, rmat_spec, lmat_spec, lmat_spec],
        out_specs=img_spec,
        scratch_shapes=[pltpu.VMEM((TBg, Hp, Wt), jnp.float32)],
        compiler_params=pltpu.CompilerParams(
            dimension_semantics=("parallel",),
            vmem_limit_bytes=vmem_limit),
    )(h2, c1, xt_p, y_p, DTr, DDr, DDl, DTl)

    out = out_p.reshape(Ng_pad, H, G, W).transpose(0, 2, 1, 3).reshape(
        Npad, H, W)
    return out[:N, None, :, :]  # back to NCHW


# ---------------------------------------------------------------------------
# Pure-JAX reference (literal transcription of the torch code) for validation.
# ---------------------------------------------------------------------------
def _conv_ref(h, x):
    FH, FW = FINAL_CONV_DIM
    Hx, Wx = x.shape[2], x.shape[3]
    kh, kw = h.shape[2], h.shape[3]
    p0 = FH - (Hx - kh + 1)
    p1 = FW - (Wx - kw + 1)
    x_pad = jnp.pad(x, ((0, 0), (0, 0),
                        (p1 // 2, p1 // 2 + 1), (p0 // 2, p0 // 2 + 1)))
    w = h[:, :, ::-1, ::-1]
    yy = jax.lax.conv_general_dilated(
        x_pad, w, window_strides=(1, 1), padding="VALID",
        dimension_numbers=("NCHW", "OIHW", "NCHW"),
        precision=jax.lax.Precision.HIGHEST)
    si = (FH - Hx) // 2
    sj = (FW - Wx) // 2
    return yy[:, :, si:si + Hx, sj:sj + Wx]


def _t_layer_ref(y, xt, D, h, param, lr):
    c, tau = param
    hp = jax.lax.Precision.HIGHEST
    h_flip = h[:, :, ::-1, ::-1]
    a = _conv_ref(h, xt) - y
    b = xt - lr * _conv_ref(h_flip, a)
    Dt = jnp.swapaxes(D, 2, 3)
    u = jnp.matmul(D, jnp.matmul(b, Dt, precision=hp), precision=hp)
    r = jnp.zeros_like(u)
    K = c.shape[0]
    for k in range(1, K + 1):
        r = r + c[k - 1, 0] * (u * jnp.exp(-((k - 1) * u * u) /
                                           (2.0 * tau ** 2)))
    return jnp.matmul(Dt, jnp.matmul(r, D, precision=hp), precision=hp)


if __name__ == "__main__":
    key = jax.random.PRNGKey(0)
    k1, k2, k3, k4, k5, k6, k7 = jax.random.split(key, 7)

    N, C, H, W = 2, 1, 16, 16
    kh = kw = 3
    K = 3

    y = jax.random.normal(k1, (N, C, H, W), jnp.float32) * 0.1
    xt = jax.random.normal(k2, (N, C, H, W), jnp.float32) * 0.1
    h = jax.random.normal(k3, (1, 1, kh, kw), jnp.float32) * 0.5
    D = jax.random.normal(k4, (1, 1, H, H), jnp.float32) / jnp.sqrt(H)
    c = jax.random.normal(k5, (K, 1), jnp.float32) * 0.5
    tau = 1.0
    learning_rate = 0.1

    out = t_layer_forward(y, xt, D, h, (c, tau), learning_rate)
    out = jax.block_until_ready(out)
    ref = jax.block_until_ready(_t_layer_ref(y, xt, D, h, (c, tau),
                                             learning_rate))
    np.testing.assert_allclose(np.asarray(out), np.asarray(ref),
                               rtol=1e-3, atol=1e-3)

    # Second config: exercises batch padding, multi-group lane packing and a
    # multi-step ("parallel") grid on the same compiled wrapper code path.
    N2 = 20
    y_b = jax.random.normal(k6, (N2, C, H, W), jnp.float32) * 0.1
    xt_b = jax.random.normal(k7, (N2, C, H, W), jnp.float32) * 0.1
    out_b = jax.block_until_ready(
        t_layer_forward(y_b, xt_b, D, h, (c, tau), learning_rate))
    ref_b = jax.block_until_ready(
        _t_layer_ref(y_b, xt_b, D, h, (c, tau), learning_rate))
    np.testing.assert_allclose(np.asarray(out_b), np.asarray(ref_b),
                               rtol=1e-3, atol=1e-3)

    print("KERNEL_OK")
</pallas_src>

<mosaic_0001>
module attributes {stable_mosaic.version = 11 : i64} {
  func.func @_t_layer_kernel(%arg0: i32, %arg1: memref<3x3xf32, #tpu.memory_space<smem>>, %arg2: memref<3xf32, #tpu.memory_space<smem>>, %arg3: memref<1x16x128xf32, #tpu.memory_space<vmem>>, %arg4: memref<1x16x128xf32, #tpu.memory_space<vmem>>, %arg5: memref<128x128xf32, #tpu.memory_space<vmem>>, %arg6: memref<128x128xf32, #tpu.memory_space<vmem>>, %arg7: memref<16x16xf32, #tpu.memory_space<vmem>>, %arg8: memref<16x16xf32, #tpu.memory_space<vmem>>, %arg9: memref<1x16x128xf32, #tpu.memory_space<vmem>>, %arg10: memref<1x25x257xf32, #tpu.memory_space<vmem>>) attributes {dimension_semantics = [#tpu.dimension_semantics<parallel>], iteration_bounds = array<i64: 1>, scalar_prefetch = 0 : i64, scratch_operands = 1 : i64, tpu.core_type = #tpu.core_type<tc>, window_params = [{transform_indices = @transform_0, window_bounds = array<i64: 3, 3>}, {transform_indices = @transform_1, window_bounds = array<i64: 3>}, {transform_indices = @transform_2, window_bounds = array<i64: 1, 16, 128>}, {transform_indices = @transform_3, window_bounds = array<i64: 1, 16, 128>}, {pipeline_mode = #tpu.pipeline_mode<synchronous>, transform_indices = @transform_4, window_bounds = array<i64: 128, 128>}, {pipeline_mode = #tpu.pipeline_mode<synchronous>, transform_indices = @transform_5, window_bounds = array<i64: 128, 128>}, {pipeline_mode = #tpu.pipeline_mode<synchronous>, transform_indices = @transform_6, window_bounds = array<i64: 16, 16>}, {pipeline_mode = #tpu.pipeline_mode<synchronous>, transform_indices = @transform_7, window_bounds = array<i64: 16, 16>}, {transform_indices = @transform_8, window_bounds = array<i64: 1, 16, 128>}]} {
    %cst = arith.constant 0.000000e+00 : f32
    %0 = vector.broadcast %cst : f32 to vector<1x1x257xf32>
    %c0 = arith.constant 0 : index
    %c7 = arith.constant 7 : index
    %c0_0 = arith.constant 0 : index
    %1 = vector.load %arg10[%c0, %c7, %c0_0] : memref<1x25x257xf32, #tpu.memory_space<vmem>>, vector<1x1x257xf32>
    tpu.vector_store %arg10[%c0, %c7, %c0_0], %0 {strides = array<i32>} : memref<1x25x257xf32, #tpu.memory_space<vmem>>, vector<1x1x257xf32>,
    %cst_1 = arith.constant 0.000000e+00 : f32
    %2 = vector.broadcast %cst_1 : f32 to vector<1x1x257xf32>
    %c0_2 = arith.constant 0 : index
    %c24 = arith.constant 24 : index
    %c0_3 = arith.constant 0 : index
    %3 = vector.load %arg10[%c0_2, %c24, %c0_3] : memref<1x25x257xf32, #tpu.memory_space<vmem>>, vector<1x1x257xf32>
    tpu.vector_store %arg10[%c0_2, %c24, %c0_3], %2 {strides = array<i32>} : memref<1x25x257xf32, #tpu.memory_space<vmem>>, vector<1x1x257xf32>,
    %4 = tpu.iota {dimensions = array<i32: 2>} : vector<1x1x128xi32>
    %c16_i32 = arith.constant 16 : i32
    %c0_i32 = arith.constant 0 : i32
    %5 = arith.cmpi eq, %c16_i32, %c0_i32 : i32
    %c1_i32 = arith.constant 1 : i32
    %6 = arith.select %5, %c1_i32, %c16_i32 : i32
    %7 = vector.broadcast %6 : i32 to vector<1x1x128xi32>
    %8 = arith.remsi %4, %7 : vector<1x1x128xi32>
    %c0_i32_4 = arith.constant 0 : i32
    %9 = vector.broadcast %c0_i32_4 : i32 to vector<1x1x128xi32>
    %10 = arith.cmpi ne, %8, %9 : vector<1x1x128xi32>
    %c0_i32_5 = arith.constant 0 : i32
    %11 = vector.broadcast %c0_i32_5 : i32 to vector<1x1x128xi32>
    %12 = arith.cmpi slt, %8, %11 : vector<1x1x128xi32>
    %c0_i32_6 = arith.constant 0 : i32
    %13 = arith.cmpi slt, %6, %c0_i32_6 : i32
    %14 = vector.broadcast %13 : i1 to vector<1x1x128xi1>
    %15 = vector.broadcast %14 : vector<1x1x128xi1> to vector<1x1x128xi1>
    %16 = arith.xori %12, %15 : vector<1x1x128xi1>
    %17 = arith.andi %16, %10 : vector<1x1x128xi1>
    %18 = vector.broadcast %6 : i32 to vector<1x1x128xi32>
    %19 = arith.addi %8, %18 : vector<1x1x128xi32>
    %20 = arith.select %17, %19, %8 : vector<1x1x128xi1>, vector<1x1x128xi32>
    %c0_7 = arith.constant 0 : index
    %c0_8 = arith.constant 0 : index
    %c0_9 = arith.constant 0 : index
    %21 = vector.load %arg3[%c0_7, %c0_8, %c0_9] : memref<1x16x128xf32, #tpu.memory_space<vmem>>, vector<1x16x128xf32>
    %c0_10 = arith.constant 0 : index
    %c8 = arith.constant 8 : index
    %c128 = arith.constant 128 : index
    %22 = vector.load %arg10[%c0_10, %c8, %c128] : memref<1x25x257xf32, #tpu.memory_space<vmem>>, vector<1x16x128xf32>
    tpu.vector_store %arg10[%c0_10, %c8, %c128], %21 {strides = array<i32>} : memref<1x25x257xf32, #tpu.memory_space<vmem>>, vector<1x16x128xf32>,
    %c0_11 = arith.constant 0 : index
    %c0_12 = arith.constant 0 : index
    %c0_13 = arith.constant 0 : index
    %23 = vector.load %arg10[%c0_11, %c0_12, %c0_13] : memref<1x25x257xf32, #tpu.memory_space<vmem>>, vector<1x25x257xf32>
    %24 = vector.extract_strided_slice %23 {offsets = [0, 0, 129], sizes = [1, 25, 128], strides = [1, 1, 1]} : vector<1x25x257xf32> to vector<1x25x128xf32>
    %c1_i32_14 = arith.constant 1 : i32
    %25 = vector.broadcast %c1_i32_14 : i32 to vector<1x1x128xi32>
    %26 = arith.addi %20, %25 : vector<1x1x128xi32>
    %c0_i32_15 = arith.constant 0 : i32
    %27 = vector.broadcast %c0_i32_15 : i32 to vector<1x1x128xi32>
    %28 = arith.cmpi sge, %26, %27 : vector<1x1x128xi32>
    %c1_i32_16 = arith.constant 1 : i32
    %29 = vector.broadcast %c1_i32_16 : i32 to vector<1x1x128xi32>
    %30 = arith.addi %20, %29 : vector<1x1x128xi32>
    %c15_i32 = arith.constant 15 : i32
    %31 = vector.broadcast %c15_i32 : i32 to vector<1x1x128xi32>
    %32 = arith.cmpi sle, %30, %31 : vector<1x1x128xi32>
    %33 = arith.andi %28, %32 : vector<1x1x128xi1>
    %cst_17 = arith.constant 0.000000e+00 : f32
    %34 = vector.shape_cast %33 : vector<1x1x128xi1> to vector<1x1x128xi1>
    %35 = vector.broadcast %34 : vector<1x1x128xi1> to vector<1x25x128xi1>
    %36 = vector.broadcast %cst_17 : f32 to vector<1x25x128xf32>
    %37 = arith.select %35, %24, %36 : vector<1x25x128xi1>, vector<1x25x128xf32>
    %c0_18 = arith.constant 0 : index
    %c0_19 = arith.constant 0 : index
    %38 = memref.load %arg1[%c0_18, %c0_19] : memref<3x3xf32, #tpu.memory_space<smem>>
    %39 = vector.extract_strided_slice %37 {offsets = [0, 9, 0], sizes = [1, 16, 128], strides = [1, 1, 1]} : vector<1x25x128xf32> to vector<1x16x128xf32>
    %40 = vector.broadcast %38 : f32 to vector<1x16x128xf32>
    %41 = arith.mulf %40, %39 : vector<1x16x128xf32>
    %c1 = arith.constant 1 : index
    %c0_20 = arith.constant 0 : index
    %42 = memref.load %arg1[%c1, %c0_20] : memref<3x3xf32, #tpu.memory_space<smem>>
    %43 = vector.extract_strided_slice %37 {offsets = [0, 8, 0], sizes = [1, 16, 128], strides = [1, 1, 1]} : vector<1x25x128xf32> to vector<1x16x128xf32>
    %44 = vector.broadcast %42 : f32 to vector<1x16x128xf32>
    %45 = arith.mulf %44, %43 : vector<1x16x128xf32>
    %46 = arith.addf %41, %45 : vector<1x16x128xf32>
    %c2 = arith.constant 2 : index
    %c0_21 = arith.constant 0 : index
    %47 = memref.load %arg1[%c2, %c0_21] : memref<3x3xf32, #tpu.memory_space<smem>>
    %48 = vector.extract_strided_slice %37 {offsets = [0, 7, 0], sizes = [1, 16, 128], strides = [1, 1, 1]} : vector<1x25x128xf32> to vector<1x16x128xf32>
    %49 = vector.broadcast %47 : f32 to vector<1x16x128xf32>
    %50 = arith.mulf %49, %48 : vector<1x16x128xf32>
    %51 = arith.addf %46, %50 : vector<1x16x128xf32>
    %52 = vector.extract_strided_slice %23 {offsets = [0, 0, 128], sizes = [1, 25, 128], strides = [1, 1, 1]} : vector<1x25x257xf32> to vector<1x25x128xf32>
    %c0_22 = arith.constant 0 : index
    %c1_23 = arith.constant 1 : index
    %53 = memref.load %arg1[%c0_22, %c1_23] : memref<3x3xf32, #tpu.memory_space<smem>>
    %54 = vector.extract_strided_slice %52 {offsets = [0, 9, 0], sizes = [1, 16, 128], strides = [1, 1, 1]} : vector<1x25x128xf32> to vector<1x16x128xf32>
    %55 = vector.broadcast %53 : f32 to vector<1x16x128xf32>
    %56 = arith.mulf %55, %54 : vector<1x16x128xf32>
    %c1_24 = arith.constant 1 : index
    %c1_25 = arith.constant 1 : index
    %57 = memref.load %arg1[%c1_24, %c1_25] : memref<3x3xf32, #tpu.memory_space<smem>>
    %58 = vector.extract_strided_slice %52 {offsets = [0, 8, 0], sizes = [1, 16, 128], strides = [1, 1, 1]} : vector<1x25x128xf32> to vector<1x16x128xf32>
    %59 = vector.broadcast %57 : f32 to vector<1x16x128xf32>
    %60 = arith.mulf %59, %58 : vector<1x16x128xf32>
    %61 = arith.addf %56, %60 : vector<1x16x128xf32>
    %c2_26 = arith.constant 2 : index
    %c1_27 = arith.constant 1 : index
    %62 = memref.load %arg1[%c2_26, %c1_27] : memref<3x3xf32, #tpu.memory_space<smem>>
    %63 = vector.extract_strided_slice %52 {offsets = [0, 7, 0], sizes = [1, 16, 128], strides = [1, 1, 1]} : vector<1x25x128xf32> to vector<1x16x128xf32>
    %64 = vector.broadcast %62 : f32 to vector<1x16x128xf32>
    %65 = arith.mulf %64, %63 : vector<1x16x128xf32>
    %66 = arith.addf %61, %65 : vector<1x16x128xf32>
    %67 = vector.extract_strided_slice %23 {offsets = [0, 0, 127], sizes = [1, 25, 128], strides = [1, 1, 1]} : vector<1x25x257xf32> to vector<1x25x128xf32>
    %c-1_i32 = arith.constant -1 : i32
    %68 = vector.broadcast %c-1_i32 : i32 to vector<1x1x128xi32>
    %69 = arith.addi %20, %68 : vector<1x1x128xi32>
    %c0_i32_28 = arith.constant 0 : i32
    %70 = vector.broadcast %c0_i32_28 : i32 to vector<1x1x128xi32>
    %71 = arith.cmpi sge, %69, %70 : vector<1x1x128xi32>
    %c-1_i32_29 = arith.constant -1 : i32
    %72 = vector.broadcast %c-1_i32_29 : i32 to vector<1x1x128xi32>
    %73 = arith.addi %20, %72 : vector<1x1x128xi32>
    %c15_i32_30 = arith.constant 15 : i32
    %74 = vector.broadcast %c15_i32_30 : i32 to vector<1x1x128xi32>
    %75 = arith.cmpi sle, %73, %74 : vector<1x1x128xi32>
    %76 = arith.andi %71, %75 : vector<1x1x128xi1>
    %cst_31 = arith.constant 0.000000e+00 : f32
    %77 = vector.shape_cast %76 : vector<1x1x128xi1> to vector<1x1x128xi1>
    %78 = vector.broadcast %77 : vector<1x1x128xi1> to vector<1x25x128xi1>
    %79 = vector.broadcast %cst_31 : f32 to vector<1x25x128xf32>
    %80 = arith.select %78, %67, %79 : vector<1x25x128xi1>, vector<1x25x128xf32>
    %c0_32 = arith.constant 0 : index
    %c2_33 = arith.constant 2 : index
    %81 = memref.load %arg1[%c0_32, %c2_33] : memref<3x3xf32, #tpu.memory_space<smem>>
    %82 = vector.extract_strided_slice %80 {offsets = [0, 9, 0], sizes = [1, 16, 128], strides = [1, 1, 1]} : vector<1x25x128xf32> to vector<1x16x128xf32>
    %83 = vector.broadcast %81 : f32 to vector<1x16x128xf32>
    %84 = arith.mulf %83, %82 : vector<1x16x128xf32>
    %c1_34 = arith.constant 1 : index
    %c2_35 = arith.constant 2 : index
    %85 = memref.load %arg1[%c1_34, %c2_35] : memref<3x3xf32, #tpu.memory_space<smem>>
    %86 = vector.extract_strided_slice %80 {offsets = [0, 8, 0], sizes = [1, 16, 128], strides = [1, 1, 1]} : vector<1x25x128xf32> to vector<1x16x128xf32>
    %87 = vector.broadcast %85 : f32 to vector<1x16x128xf32>
    %88 = arith.mulf %87, %86 : vector<1x16x128xf32>
    %89 = arith.addf %84, %88 : vector<1x16x128xf32>
    %c2_36 = arith.constant 2 : index
    %c2_37 = arith.constant 2 : index
    %90 = memref.load %arg1[%c2_36, %c2_37] : memref<3x3xf32, #tpu.memory_space<smem>>
    %91 = vector.extract_strided_slice %80 {offsets = [0, 7, 0], sizes = [1, 16, 128], strides = [1, 1, 1]} : vector<1x25x128xf32> to vector<1x16x128xf32>
    %92 = vector.broadcast %90 : f32 to vector<1x16x128xf32>
    %93 = arith.mulf %92, %91 : vector<1x16x128xf32>
    %94 = arith.addf %89, %93 : vector<1x16x128xf32>
    %95 = arith.addf %51, %66 : vector<1x16x128xf32>
    %96 = arith.addf %95, %94 : vector<1x16x128xf32>
    %c0_38 = arith.constant 0 : index
    %c0_39 = arith.constant 0 : index
    %c0_40 = arith.constant 0 : index
    %97 = vector.load %arg4[%c0_38, %c0_39, %c0_40] : memref<1x16x128xf32, #tpu.memory_space<vmem>>, vector<1x16x128xf32>
    %98 = arith.subf %96, %97 : vector<1x16x128xf32>
    %c0_41 = arith.constant 0 : index
    %c8_42 = arith.constant 8 : index
    %c128_43 = arith.constant 128 : index
    %99 = vector.load %arg10[%c0_41, %c8_42, %c128_43] : memref<1x25x257xf32, #tpu.memory_space<vmem>>, vector<1x16x128xf32>
    tpu.vector_store %arg10[%c0_41, %c8_42, %c128_43], %98 {strides = array<i32>} : memref<1x25x257xf32, #tpu.memory_space<vmem>>, vector<1x16x128xf32>,
    %c0_44 = arith.constant 0 : index
    %c0_45 = arith.constant 0 : index
    %c0_46 = arith.constant 0 : index
    %100 = vector.load %arg10[%c0_44, %c0_45, %c0_46] : memref<1x25x257xf32, #tpu.memory_space<vmem>>, vector<1x25x257xf32>
    %101 = vector.extract_strided_slice %100 {offsets = [0, 0, 129], sizes = [1, 25, 128], strides = [1, 1, 1]} : vector<1x25x257xf32> to vector<1x25x128xf32>
    %c1_i32_47 = arith.constant 1 : i32
    %102 = vector.broadcast %c1_i32_47 : i32 to vector<1x1x128xi32>
    %103 = arith.addi %20, %102 : vector<1x1x128xi32>
    %c0_i32_48 = arith.constant 0 : i32
    %104 = vector.broadcast %c0_i32_48 : i32 to vector<1x1x128xi32>
    %105 = arith.cmpi sge, %103, %104 : vector<1x1x128xi32>
    %c1_i32_49 = arith.constant 1 : i32
    %106 = vector.broadcast %c1_i32_49 : i32 to vector<1x1x128xi32>
    %107 = arith.addi %20, %106 : vector<1x1x128xi32>
    %c15_i32_50 = arith.constant 15 : i32
    %108 = vector.broadcast %c15_i32_50 : i32 to vector<1x1x128xi32>
    %109 = arith.cmpi sle, %107, %108 : vector<1x1x128xi32>
    %110 = arith.andi %105, %109 : vector<1x1x128xi1>
    %cst_51 = arith.constant 0.000000e+00 : f32
    %111 = vector.shape_cast %110 : vector<1x1x128xi1> to vector<1x1x128xi1>
    %112 = vector.broadcast %111 : vector<1x1x128xi1> to vector<1x25x128xi1>
    %113 = vector.broadcast %cst_51 : f32 to vector<1x25x128xf32>
    %114 = arith.select %112, %101, %113 : vector<1x25x128xi1>, vector<1x25x128xf32>
    %c2_52 = arith.constant 2 : index
    %c2_53 = arith.constant 2 : index
    %115 = memref.load %arg1[%c2_52, %c2_53] : memref<3x3xf32, #tpu.memory_space<smem>>
    %116 = vector.extract_strided_slice %114 {offsets = [0, 9, 0], sizes = [1, 16, 128], strides = [1, 1, 1]} : vector<1x25x128xf32> to vector<1x16x128xf32>
    %117 = vector.broadcast %115 : f32 to vector<1x16x128xf32>
    %118 = arith.mulf %117, %116 : vector<1x16x128xf32>
    %c1_54 = arith.constant 1 : index
    %c2_55 = arith.constant 2 : index
    %119 = memref.load %arg1[%c1_54, %c2_55] : memref<3x3xf32, #tpu.memory_space<smem>>
    %120 = vector.extract_strided_slice %114 {offsets = [0, 8, 0], sizes = [1, 16, 128], strides = [1, 1, 1]} : vector<1x25x128xf32> to vector<1x16x128xf32>
    %121 = vector.broadcast %119 : f32 to vector<1x16x128xf32>
    %122 = arith.mulf %121, %120 : vector<1x16x128xf32>
    %123 = arith.addf %118, %122 : vector<1x16x128xf32>
    %c0_56 = arith.constant 0 : index
    %c2_57 = arith.constant 2 : index
    %124 = memref.load %arg1[%c0_56, %c2_57] : memref<3x3xf32, #tpu.memory_space<smem>>
    %125 = vector.extract_strided_slice %114 {offsets = [0, 7, 0], sizes = [1, 16, 128], strides = [1, 1, 1]} : vector<1x25x128xf32> to vector<1x16x128xf32>
    %126 = vector.broadcast %124 : f32 to vector<1x16x128xf32>
    %127 = arith.mulf %126, %125 : vector<1x16x128xf32>
    %128 = arith.addf %123, %127 : vector<1x16x128xf32>
    %129 = vector.extract_strided_slice %100 {offsets = [0, 0, 128], sizes = [1, 25, 128], strides = [1, 1, 1]} : vector<1x25x257xf32> to vector<1x25x128xf32>
    %c2_58 = arith.constant 2 : index
    %c1_59 = arith.constant 1 : index
    %130 = memref.load %arg1[%c2_58, %c1_59] : memref<3x3xf32, #tpu.memory_space<smem>>
    %131 = vector.extract_strided_slice %129 {offsets = [0, 9, 0], sizes = [1, 16, 128], strides = [1, 1, 1]} : vector<1x25x128xf32> to vector<1x16x128xf32>
    %132 = vector.broadcast %130 : f32 to vector<1x16x128xf32>
    %133 = arith.mulf %132, %131 : vector<1x16x128xf32>
    %c1_60 = arith.constant 1 : index
    %c1_61 = arith.constant 1 : index
    %134 = memref.load %arg1[%c1_60, %c1_61] : memref<3x3xf32, #tpu.memory_space<smem>>
    %135 = vector.extract_strided_slice %129 {offsets = [0, 8, 0], sizes = [1, 16, 128], strides = [1, 1, 1]} : vector<1x25x128xf32> to vector<1x16x128xf32>
    %136 = vector.broadcast %134 : f32 to vector<1x16x128xf32>
    %137 = arith.mulf %136, %135 : vector<1x16x128xf32>
    %138 = arith.addf %133, %137 : vector<1x16x128xf32>
    %c0_62 = arith.constant 0 : index
    %c1_63 = arith.constant 1 : index
    %139 = memref.load %arg1[%c0_62, %c1_63] : memref<3x3xf32, #tpu.memory_space<smem>>
    %140 = vector.extract_strided_slice %129 {offsets = [0, 7, 0], sizes = [1, 16, 128], strides = [1, 1, 1]} : vector<1x25x128xf32> to vector<1x16x128xf32>
    %141 = vector.broadcast %139 : f32 to vector<1x16x128xf32>
    %142 = arith.mulf %141, %140 : vector<1x16x128xf32>
    %143 = arith.addf %138, %142 : vector<1x16x128xf32>
    %144 = vector.extract_strided_slice %100 {offsets = [0, 0, 127], sizes = [1, 25, 128], strides = [1, 1, 1]} : vector<1x25x257xf32> to vector<1x25x128xf32>
    %c-1_i32_64 = arith.constant -1 : i32
    %145 = vector.broadcast %c-1_i32_64 : i32 to vector<1x1x128xi32>
    %146 = arith.addi %20, %145 : vector<1x1x128xi32>
    %c0_i32_65 = arith.constant 0 : i32
    %147 = vector.broadcast %c0_i32_65 : i32 to vector<1x1x128xi32>
    %148 = arith.cmpi sge, %146, %147 : vector<1x1x128xi32>
    %c-1_i32_66 = arith.constant -1 : i32
    %149 = vector.broadcast %c-1_i32_66 : i32 to vector<1x1x128xi32>
    %150 = arith.addi %20, %149 : vector<1x1x128xi32>
    %c15_i32_67 = arith.constant 15 : i32
    %151 = vector.broadcast %c15_i32_67 : i32 to vector<1x1x128xi32>
    %152 = arith.cmpi sle, %150, %151 : vector<1x1x128xi32>
    %153 = arith.andi %148, %152 : vector<1x1x128xi1>
    %cst_68 = arith.constant 0.000000e+00 : f32
    %154 = vector.shape_cast %153 : vector<1x1x128xi1> to vector<1x1x128xi1>
    %155 = vector.broadcast %154 : vector<1x1x128xi1> to vector<1x25x128xi1>
    %156 = vector.broadcast %cst_68 : f32 to vector<1x25x128xf32>
    %157 = arith.select %155, %144, %156 : vector<1x25x128xi1>, vector<1x25x128xf32>
    %c2_69 = arith.constant 2 : index
    %c0_70 = arith.constant 0 : index
    %158 = memref.load %arg1[%c2_69, %c0_70] : memref<3x3xf32, #tpu.memory_space<smem>>
    %159 = vector.extract_strided_slice %157 {offsets = [0, 9, 0], sizes = [1, 16, 128], strides = [1, 1, 1]} : vector<1x25x128xf32> to vector<1x16x128xf32>
    %160 = vector.broadcast %158 : f32 to vector<1x16x128xf32>
    %161 = arith.mulf %160, %159 : vector<1x16x128xf32>
    %c1_71 = arith.constant 1 : index
    %c0_72 = arith.constant 0 : index
    %162 = memref.load %arg1[%c1_71, %c0_72] : memref<3x3xf32, #tpu.memory_space<smem>>
    %163 = vector.extract_strided_slice %157 {offsets = [0, 8, 0], sizes = [1, 16, 128], strides = [1, 1, 1]} : vector<1x25x128xf32> to vector<1x16x128xf32>
    %164 = vector.broadcast %162 : f32 to vector<1x16x128xf32>
    %165 = arith.mulf %164, %163 : vector<1x16x128xf32>
    %166 = arith.addf %161, %165 : vector<1x16x128xf32>
    %c0_73 = arith.constant 0 : index
    %c0_74 = arith.constant 0 : index
    %167 = memref.load %arg1[%c0_73, %c0_74] : memref<3x3xf32, #tpu.memory_space<smem>>
    %168 = vector.extract_strided_slice %157 {offsets = [0, 7, 0], sizes = [1, 16, 128], strides = [1, 1, 1]} : vector<1x25x128xf32> to vector<1x16x128xf32>
    %169 = vector.broadcast %167 : f32 to vector<1x16x128xf32>
    %170 = arith.mulf %169, %168 : vector<1x16x128xf32>
    %171 = arith.addf %166, %170 : vector<1x16x128xf32>
    %172 = arith.addf %128, %143 : vector<1x16x128xf32>
    %173 = arith.addf %172, %171 : vector<1x16x128xf32>
    %c0_75 = arith.constant 0 : index
    %c0_76 = arith.constant 0 : index
    %c0_77 = arith.constant 0 : index
    %174 = vector.load %arg3[%c0_75, %c0_76, %c0_77] : memref<1x16x128xf32, #tpu.memory_space<vmem>>, vector<1x16x128xf32>
    %cst_78 = arith.constant 1.000000e-01 : f32
    %175 = vector.broadcast %cst_78 : f32 to vector<1x16x128xf32>
    %176 = arith.mulf %175, %173 : vector<1x16x128xf32>
    %177 = arith.subf %174, %176 : vector<1x16x128xf32>
    %178 = vector.shape_cast %177 : vector<1x16x128xf32> to vector<16x128xf32>
    %c0_79 = arith.constant 0 : index
    %c0_80 = arith.constant 0 : index
    %179 = vector.load %arg5[%c0_79, %c0_80] : memref<128x128xf32, #tpu.memory_space<vmem>>, vector<128x128xf32>
    %cst_81 = arith.constant dense<0.000000e+00> : vector<16x128xf32>
    %180 = tpu.matmul %178, %179, %cst_81 {dimension_numbers = #tpu.dot_dimension_numbers<[1], [0], [0], [1], [0, 0, 1, 1], [], []>, precision = #tpu.contract_precision<fp32>} : vector<16x128xf32>, vector<128x128xf32>, vector<16x128xf32> -> vector<16x128xf32>
    %c0_82 = arith.constant 0 : index
    %c0_83 = arith.constant 0 : index
    %181 = vector.load %arg7[%c0_82, %c0_83] : memref<16x16xf32, #tpu.memory_space<vmem>>, vector<16x16xf32>
    %cst_84 = arith.constant dense<0.000000e+00> : vector<16x128xf32>
    %182 = tpu.matmul %181, %180, %cst_84 {dimension_numbers = #tpu.dot_dimension_numbers<[1], [0], [0], [1], [0, 0, 1, 1], [], []>, precision = #tpu.contract_precision<fp32>} : vector<16x16xf32>, vector<16x128xf32>, vector<16x128xf32> -> vector<16x128xf32>
    %183 = arith.mulf %182, %182 : vector<16x128xf32>
    %cst_85 = arith.constant 0.000000e+00 : f32
    %184 = vector.broadcast %cst_85 : f32 to vector<16x128xf32>
    %185 = arith.subf %184, %183 : vector<16x128xf32>
    %cst_86 = arith.constant 5.000000e-01 : f32
    %186 = vector.broadcast %cst_86 : f32 to vector<16x128xf32>
    %187 = arith.mulf %185, %186 : vector<16x128xf32>
    %188 = math.exp %187 : vector<16x128xf32>
    %c2_87 = arith.constant 2 : index
    %189 = memref.load %arg2[%c2_87] : memref<3xf32, #tpu.memory_space<smem>>
    %190 = vector.broadcast %189 : f32 to vector<16x128xf32>
    %191 = arith.mulf %190, %188 : vector<16x128xf32>
    %c1_88 = arith.constant 1 : index
    %192 = memref.load %arg2[%c1_88] : memref<3xf32, #tpu.memory_space<smem>>
    %193 = vector.broadcast %192 : f32 to vector<16x128xf32>
    %194 = arith.addf %191, %193 : vector<16x128xf32>
    %195 = arith.mulf %194, %188 : vector<16x128xf32>
    %c0_89 = arith.constant 0 : index
    %196 = memref.load %arg2[%c0_89] : memref<3xf32, #tpu.memory_space<smem>>
    %197 = vector.broadcast %196 : f32 to vector<16x128xf32>
    %198 = arith.addf %195, %197 : vector<16x128xf32>
    %199 = arith.mulf %182, %198 : vector<16x128xf32>
    %c0_90 = arith.constant 0 : index
    %c0_91 = arith.constant 0 : index
    %200 = vector.load %arg6[%c0_90, %c0_91] : memref<128x128xf32, #tpu.memory_space<vmem>>, vector<128x128xf32>
    %cst_92 = arith.constant dense<0.000000e+00> : vector<16x128xf32>
    %201 = tpu.matmul %199, %200, %cst_92 {dimension_numbers = #tpu.dot_dimension_numbers<[1], [0], [0], [1], [0, 0, 1, 1], [], []>, precision = #tpu.contract_precision<fp32>} : vector<16x128xf32>, vector<128x128xf32>, vector<16x128xf32> -> vector<16x128xf32>
    %c0_93 = arith.constant 0 : index
    %c0_94 = arith.constant 0 : index
    %202 = vector.load %arg8[%c0_93, %c0_94] : memref<16x16xf32, #tpu.memory_space<vmem>>, vector<16x16xf32>
    %cst_95 = arith.constant dense<0.000000e+00> : vector<16x128xf32>
    %203 = tpu.matmul %202, %201, %cst_95 {dimension_numbers = #tpu.dot_dimension_numbers<[1], [0], [0], [1], [0, 0, 1, 1], [], []>, precision = #tpu.contract_precision<fp32>} : vector<16x16xf32>, vector<16x128xf32>, vector<16x128xf32> -> vector<16x128xf32>
    %204 = vector.shape_cast %203 : vector<16x128xf32> to vector<1x16x128xf32>
    %c0_96 = arith.constant 0 : index
    %c0_97 = arith.constant 0 : index
    %c0_98 = arith.constant 0 : index
    %205 = vector.load %arg9[%c0_96, %c0_97, %c0_98] : memref<1x16x128xf32, #tpu.memory_space<vmem>>, vector<1x16x128xf32>
    tpu.vector_store %arg9[%c0_96, %c0_97, %c0_98], %204 {strides = array<i32>} : memref<1x16x128xf32, #tpu.memory_space<vmem>>, vector<1x16x128xf32>,
    return
  }
  func.func @transform_0(%arg0: i32) -> (i32, i32) {
    %c0_i32 = arith.constant 0 : i32
    %c0_i32_0 = arith.constant 0 : i32
    %c0_i32_1 = arith.constant 0 : i32
    return %c0_i32, %c0_i32_0 : i32, i32
  }
  func.func @transform_1(%arg0: i32) -> i32 {
    %c0_i32 = arith.constant 0 : i32
    %c0_i32_0 = arith.constant 0 : i32
    return %c0_i32 : i32
  }
  func.func @transform_2(%arg0: i32) -> (i32, i32, i32) {
    %c0_i32 = arith.constant 0 : i32
    %c0_i32_0 = arith.constant 0 : i32
    %c0_i32_1 = arith.constant 0 : i32
    return %arg0, %c0_i32, %c0_i32_0 : i32, i32, i32
  }
  func.func @transform_3(%arg0: i32) -> (i32, i32, i32) {
    %c0_i32 = arith.constant 0 : i32
    %c0_i32_0 = arith.constant 0 : i32
    %c0_i32_1 = arith.constant 0 : i32
    return %arg0, %c0_i32, %c0_i32_0 : i32, i32, i32
  }
  func.func @transform_4(%arg0: i32) -> (i32, i32) {
    %c0_i32 = arith.constant 0 : i32
    %c0_i32_0 = arith.constant 0 : i32
    %c0_i32_1 = arith.constant 0 : i32
    return %c0_i32, %c0_i32_0 : i32, i32
  }
  func.func @transform_5(%arg0: i32) -> (i32, i32) {
    %c0_i32 = arith.constant 0 : i32
    %c0_i32_0 = arith.constant 0 : i32
    %c0_i32_1 = arith.constant 0 : i32
    return %c0_i32, %c0_i32_0 : i32, i32
  }
  func.func @transform_6(%arg0: i32) -> (i32, i32) {
    %c0_i32 = arith.constant 0 : i32
    %c0_i32_0 = arith.constant 0 : i32
    %c0_i32_1 = arith.constant 0 : i32
    return %c0_i32, %c0_i32_0 : i32, i32
  }
  func.func @transform_7(%arg0: i32) -> (i32, i32) {
    %c0_i32 = arith.constant 0 : i32
    %c0_i32_0 = arith.constant 0 : i32
    %c0_i32_1 = arith.constant 0 : i32
    return %c0_i32, %c0_i32_0 : i32, i32
  }
  func.func @transform_8(%arg0: i32) -> (i32, i32, i32) {
    %c0_i32 = arith.constant 0 : i32
    %c0_i32_0 = arith.constant 0 : i32
    %c0_i32_1 = arith.constant 0 : i32
    return %arg0, %c0_i32, %c0_i32_0 : i32, i32, i32
  }
}

</mosaic_0001>

<bundles_post_ra>
// kernel: tpu_custom_call.1
= control target key start
LH: loop header
LB: loop body
LE: loop exit
PB: predicated region body
PF: predicated region fallthrough
CT: control target
= control target key end

     0   :  { %13 = vsyncpa [#allocation6], 0  ;;  %s5210_s0 = inlined_call_operand.hbm [shape: f32[3,3], index: 0, kind: input, shape index: {}]   ;;  %s5211_s1 = inlined_call_operand.vmem [shape: f32[3], index: 1, kind: input, shape index: {}]   ;;  %s5212_s2 = inlined_call_operand.hbm [shape: f32[1,16,128], index: 2, kind: input, shape index: {}]   ;;  %s5213_s3 = inlined_call_operand.hbm [shape: f32[1,16,128], index: 3, kind: input, shape index: {}]   ;;  %s5214_s4 = inlined_call_operand.hbm [shape: f32[128,128], index: 4, kind: input, shape index: {}]   ;;  %s5215_s5 = inlined_call_operand.hbm [shape: f32[128,128], index: 5, kind: input, shape index: {}]   ;;  %s5216_s6 = inlined_call_operand.hbm [shape: f32[16,16], index: 6, kind: input, shape index: {}]   ;;  %s5217_s7 = inlined_call_operand.hbm [shape: f32[16,16], index: 7, kind: input, shape index: {}]   ;;  %s5218_s8 = inlined_call_operand.hbm [shape: f32[1,16,128], index: 8, kind: output, shape index: {}]  }
   0x1   :  { %14 = vsyncpa [#allocation7], 0 }
   0x2   :  { %15 = vsyncpa [#allocation4], 0 }
   0x3   :  { %16 = vsyncpa [#allocation11], 0 }
   0x4   :  { %17 = vsyncpa [#allocation14], 0 }
   0x5   :  { %18 = vsyncpa [#allocation17], 0 }
   0x6   :  { %19 = vsyncpa [#allocation5], 0  ;;  %s4077_s27 = smov [#allocation10]   ;;  %s4078_s29 = smov [#allocation13]  }
   0x7   :  { %s55_s28 = sshll.u32 %s4077_s27, 4  ;;  %s79_s30 = sshll.u32 %s4078_s29, 4  ;;  %s56_s28 = int_to_ptr.vmem [resolvable:$true] %s55_s28  ;;  %s80_s30 = int_to_ptr.vmem [resolvable:$true] %s79_s30 }
   0x8   :  { %s3911_s9 = scalar_lea.vmem %s56_s28, 256  ;;  %p3916_p1 = scmp.lt.s32.totalorder %s56_s28, %s56_s28 }
   0x9   :  { %p3912_p0 = scmp.ne.s32.totalorder %s56_s28, %s3911_s9  ;;  %p3917_p2 = scmp.lt.s32.totalorder %s3911_s9, %s3911_s9 }
   0xb   :  { %p3918_p3 = por %p3917_p2, %p3916_p1 }
   0xd   :  { %p3919_p4 = pnand %p3918_p3, %p3912_p0 }
   0xf   :  { %3922 = shalt.err (!%p3919_p4)
}
  0x10   :  { %s4079_s10 = smov 128   ;;  %s4080_s11 = smov 8  }
  0x11   :  { %61 = dma.hbm_to_vmem [thread:$0]  %s5213_s3, 256, %s56_s28, [#allocation11], %s4079_s10, %s4079_s10, %s4080_s11  }
  0x12   :  { %s3931_s14 = scalar_lea.vmem %s80_s30, 2048  ;;  %p3936_p6 = scmp.lt.s32.totalorder %s80_s30, %s80_s30 }
  0x13   :  { %p3932_p5 = scmp.ne.s32.totalorder %s80_s30, %s3931_s14  ;;  %p3937_p7 = scmp.lt.s32.totalorder %s3931_s14, %s3931_s14 }
  0x15   :  { %p3938_p8 = por %p3937_p7, %p3936_p6 }
  0x17   :  { %p3939_p9 = pnand %p3938_p8, %p3932_p5 }
  0x19   :  { %3942 = shalt.err (!%p3939_p9)
}
  0x1a   :  { %85 = dma.hbm_to_vmem [thread:$0]  %s5215_s5, 2048, %s80_s30, [#allocation14], %s4079_s10, %s4079_s10, %s4080_s11  }
  0x1b   :  { %s34_s19 = sshll.u32 %s5211_s1, 4  ;;  %s4081_s20 = smov [#allocation3]   ;;  %s35_s19 = int_to_ptr.vmem [resolvable:$true] %s34_s19 }
  0x1c   :  { %27 = dma.hbm_to_smem %s5210_s0, 64, %s4081_s20, [#allocation6]  }
  0x1d   :  { %s3951_s22 = scalar_lea.vmem %s35_s19, 16  ;;  %p3956_p11 = scmp.lt.s32.totalorder %s35_s19, %s35_s19 }
  0x1e   :  { %p3952_p10 = scmp.ne.s32.totalorder %s35_s19, %s3951_s22  ;;  %p3957_p12 = scmp.lt.s32.totalorder %s3951_s22, %s3951_s22 }
  0x20   :  { %p3958_p13 = por %p3957_p12, %p3956_p11 }
  0x22   :  { %p3959_p0 = pnand %p3958_p13, %p3952_p10 }
  0x24   :  { %3962 = shalt.err (!%p3959_p0)
}
  0x25   :  { %s4082_s23 = smov [#allocation8]   ;;  %s4083_s5 = smov [#allocation9]  }
  0x26   :  { %37 = dma.vmem_to_smem %s35_s19, 16, %s4082_s23, [#allocation7]  }
  0x27   :  { %s43_s24 = sshll.u32 %s4083_s5, 4  ;;  %s4084_s25 = smov [#allocation12]   ;;  %s44_s24 = int_to_ptr.vmem [resolvable:$true] %s43_s24 }
  0x28   :  { %s67_s26 = sshll.u32 %s4084_s25, 4  ;;  %s3971_s1 = scalar_lea.vmem %s44_s24, 256  ;;  %s68_s26 = int_to_ptr.vmem [resolvable:$true] %s67_s26 }
  0x29   :  { %p3972_p1 = scmp.ne.s32.totalorder %s44_s24, %s3971_s1  ;;  %p3976_p2 = scmp.lt.s32.totalorder %s44_s24, %s44_s24 }
  0x2a   :  { %p3977_p3 = scmp.lt.s32.totalorder %s3971_s1, %s3971_s1 }
  0x2c   :  { %p3978_p4 = por %p3977_p3, %p3976_p2 }
  0x2e   :  { %p3979_p5 = pnand %p3978_p4, %p3972_p1 }
  0x30   :  { %3982 = shalt.err (!%p3979_p5)
}
  0x31   :  { %49 = dma.hbm_to_vmem [thread:$0]  %s5212_s2, 256, %s44_s24, [#allocation4], %s4079_s10, %s4079_s10, %s4080_s11  }
  0x32   :  { %s3991_s28 = scalar_lea.vmem %s68_s26, 2048  ;;  %p3996_p7 = scmp.lt.s32.totalorder %s68_s26, %s68_s26 }
  0x33   :  { %p3992_p6 = scmp.ne.s32.totalorder %s68_s26, %s3991_s28  ;;  %p3997_p8 = scmp.lt.s32.totalorder %s3991_s28, %s3991_s28 }
  0x35   :  { %p3998_p9 = por %p3997_p8, %p3996_p7 }
  0x37   :  { %p3999_p10 = pnand %p3998_p9, %p3992_p6 }
  0x39   :  { %4002 = shalt.err (!%p3999_p10)
}
  0x3a   :  { %73 = dma.hbm_to_vmem [thread:$0]  %s5214_s4, 2048, %s68_s26, [#allocation11], %s4079_s10, %s4079_s10, %s4080_s11  }
  0x3b   :  { %s4085_s9 = smov [#allocation15]   ;;  %s4086_s13 = smov [#allocation16]  }
  0x3c   :  { %s91_s12 = sshll.u32 %s4085_s9, 4  ;;  %s103_s14 = sshll.u32 %s4086_s13, 4  ;;  %s92_s12 = int_to_ptr.vmem [resolvable:$true] %s91_s12  ;;  %s104_s14 = int_to_ptr.vmem [resolvable:$true] %s103_s14 }
  0x3d   :  { %s4011_s2 = scalar_lea.vmem %s92_s12, 256  ;;  %p4016_p12 = scmp.lt.s32.totalorder %s92_s12, %s92_s12 }
  0x3e   :  { %p4012_p11 = scmp.ne.s32.totalorder %s92_s12, %s4011_s2  ;;  %p4017_p13 = scmp.lt.s32.totalorder %s4011_s2, %s4011_s2 }
  0x40   :  { %p4018_p0 = por %p4017_p13, %p4016_p12 }
  0x42   :  { %p4019_p1 = pnand %p4018_p0, %p4012_p11 }
  0x44   :  { %4022 = shalt.err (!%p4019_p1)
}
  0x45   :  { %97 = dma.hbm_to_vmem [thread:$0]  %s5216_s6, 256, %s92_s12, [#allocation14], %s4079_s10, %s4079_s10, %s4080_s11  }
  0x46   :  { %s4031_s4 = scalar_lea.vmem %s104_s14, 256  ;;  %p4036_p3 = scmp.lt.s32.totalorder %s104_s14, %s104_s14 }
  0x47   :  { %p4032_p2 = scmp.ne.s32.totalorder %s104_s14, %s4031_s4  ;;  %p4037_p4 = scmp.lt.s32.totalorder %s4031_s4, %s4031_s4 }
  0x49   :  { %p4038_p5 = por %p4037_p4, %p4036_p3 }
  0x4b   :  { %p4039_p6 = pnand %p4038_p5, %p4032_p2 }
  0x4d   :  { %4042 = shalt.err (!%p4039_p6)
}
  0x4e   :  { %109 = dma.hbm_to_vmem [thread:$0]  %s5217_s7, 256, %s104_s14, [#allocation17], %s4079_s10, %s4079_s10, %s4080_s11  }
  0x4f   :  { %4063 = dma.done.wait [#allocation6], 64  }
  0x50   :  { %4064 = vsyncadd [#allocation6], 4294967232 }
  0x51   :  { %4065 = dma.done.wait [#allocation7], 16  }
  0x52   :  { %4066 = vsyncadd [#allocation7], 4294967280 }
  0x53   :  { %4067 = dma.done.wait [#allocation4], 256  }
  0x54   :  { %4068 = vsyncadd [#allocation4], 4294967040 }
  0x55   :  { %4069 = dma.done.wait [#allocation11], 2304  }
  0x56   :  { %4070 = vsyncadd [#allocation11], 4294964992 }
  0x57   :  { %4071 = dma.done.wait [#allocation14], 2304  }
  0x58   :  { %4072 = vsyncadd [#allocation14], 4294964992 }
  0x59   :  { %4073 = dma.done.wait [#allocation17], 256  }
  0x5a   :  { %4074 = vsyncadd [#allocation17], 4294967040 }
  0x5b   :  { %134 = sfence }
  0x5c   :  { %v171_v0 = vld [vmem:[#allocation2 + $0x40] sm:$0xff]  ;;  %v168_v1 = vld [vmem:[#allocation2 + $0x28] sm:$0xff]  ;;  %v135_v2 = vlaneseq  ;;  %s4087_s6 = smov 127   ;;  %v4088_v5 = vmov 0.0   ;;  %v166_v8 = vld [vmem:[#allocation2 + $0x18] sm:$0xff]  ;;  %s4089_s7 = smov 1  }
  0x5d   :  { %199 = vrot.lane.b32.xlu1 %v171_v0, %s4087_s6  ;;  %195 = vrot.lane.b32.xlu0 %v168_v1, %s4087_s6  ;;  %v4180_v3 = vld [vmem:[#allocation9 + $0x8] sm:$0xff]  ;;  %v4182_v4 = vld [vmem:[#allocation9] sm:$0xff]  ;;  %v169_v9 = vld [vmem:[#allocation2 + $0x30] sm:$0xff]  ;;  %s3102_s19 = sld [smem:[#allocation3 + $0x81]]  ;;  %vm205_vm1 = vcmask 1039360   ;;  %vm247_vm3 = vcmask 1041408  }
  0x5e   :  { %vm137_vm0 = vcmp.lt.s32.totalorder %v135_v2, 257  ;;  %v643_v14 = vld [vmem:[#allocation12 + $0x78] sm:$0xff]  ;;  %v146_v22 = vand.u32 127, %v135_v2  ;;  %s3103_s20 = sld [smem:[#allocation3 + $0x101]]  ;;  %vm229_vm4 = vcmask 1040384   ;;  %vm324_vm5 = vcmask 7168  }
  0x5f   :  { %140 = vst.msk [vmem:[#allocation2 + $0x7] ss:$8 sm:$0x7] %vm137_vm0, %v4088_v5  ;;  %143 = vst.msk [vmem:[#allocation2 + $0x48] ss:$8 sm:$0x7] %vm137_vm0, %v4088_v5 }
  0x60   :  { %v4220_v15 = vand.u32 4294901760, %v643_v14  ;;  %v151_v23 = vand.u32 15, %v146_v22  ;;  %s3099_s3 = sld [smem:[#allocation3 + $0x80]]  ;;  %v4284_v50 = vld [vmem:[#allocation10] sm:$0xff]  ;;  %v4292_v56 = vld [vmem:[#allocation10 + $0x8] sm:$0xff]  ;;  %vm398_vm7 = vcmask 1046528  }
  0x61   :  { %197 = vrot.lane.b32.xlu1 %v4180_v3, %s4087_s6  ;;  %193 = vrot.lane.b32.xlu0 %v4182_v4, %s4087_s6  ;;  %s3101_s21 = sld [smem:[#allocation3 + $0x1]]  ;;  %v386_v5 = vrot.slane %v4284_v50, 7  ;;  %vm1330_vm8 = vcmask 130048   ;;  %s4090_s27 = smov [#allocation18]  }
  0x62   :  { %v4225_v18 = vsub.f32 %v643_v14, %v4220_v15  ;;  %3381 = vmatprep.subr.mxu0 %v4220_v15  ;;  %v4239_v24 = vadd.s32 1, %v151_v23  ;;  %s3100_s22 = sld [smem:[#allocation3 + $0x100]]  ;;  %v4262_v39 = vadd.s32 4294967295, %v151_v23  ;;  %s3082_s28 = sshll.u32 %s4090_s27, 4  ;;  %s3083_s28 = int_to_ptr.vmem [resolvable:$true] %s3082_s28 }
  0x63   :  { %3382 = vmatpush3.msra.mxu0 %v4220_v15  ;;  %v4241_v27 = vstv %s3102_s19  ;;  %s4246_s23 = sld [smem:[#allocation3]]  ;;  %s4043_s29 = scalar_lea.vmem %s3083_s28, 256 }
  0x64   :  { %v4233_v19 = vand.u32 4294901760, %v4225_v18  ;;  %vm177_vm2 = vcmp.le.s32.totalorder %v4239_v24, 15  ;;  %v4244_v28 = vstv %s3103_s20  ;;  %v266_v32 = vmul.f32 %v4241_v27, %v4182_v4  ;;  %s4264_s5 = sld [smem:[#allocation3 + $0x82]]  ;;  %p4044_p7 = scmp.ne.s32.totalorder %s3083_s28, %s4043_s29 }
  0x65   :  { %v267_v33 = vmul.f32 %v4241_v27, %v4180_v3  ;;  %v282_v40 = vmul.f32 %v4244_v28, %v4182_v4  ;;  %v283_v41 = vmul.f32 %v4244_v28, %v4180_v3  ;;  %s4282_s24 = sld [smem:[#allocation3 + $0x2]]  ;;  %vm299_vm6 = vcmp.ge.s32.totalorder %v4262_v39, 0  ;;  %p4048_p8 = scmp.lt.s32.totalorder %s3083_s28, %s3083_s28 }
  0x66   :  { %v165_v6 = vld [vmem:[#allocation2 + $0x10] sm:$0xff]  ;;  %v4188_v7 = vld [vmem:[#allocation2 + $0x8] sm:$0xff]  ;;  %v174_v10 = vld [vmem:[#allocation2 + $0x58] sm:$0x1]  ;;  %5288 = vst [vmem:[#allocation26_spill] sm:$0xff] %v4233_v19  ;;  %v749_v20 = vsub.f32 %v4225_v18, %v4233_v19  ;;  %v4248_v29 = vstv %s3099_s3  ;;  %v270_v47 = vrot.slane %v266_v32, 7  ;;  %p4049_p9 = scmp.lt.s32.totalorder %s4043_s29, %s4043_s29 }
  0x67   :  { %191 = vrot.lane.b32.xlu1 %v165_v6, %s4087_s6  ;;  %189 = vrot.lane.b32.xlu0 %v4188_v7, %s4087_s6  ;;  %v4199_v11 = vld [vmem:[#allocation2 + $0x50] sm:$0x1]  ;;  %v4204_v12 = vld [vmem:[#allocation2] sm:$0xff]  ;;  %v172_v13 = vld [vmem:[#allocation2 + $0x48] sm:$0x1]  ;;  %v4256_v36 = vstv %s3101_s21  ;;  %v281_v42 = vmul.f32 %v4244_v28, %v4188_v7  ;;  %v271_v48 = vrot.slane %v267_v33, 7 }
  0x68   :  { %v419_v16 = vld [vmem:[#allocation2 + $0x58] sm:$0x1]  ;;  %v4222_v17 = vld [vmem:[#allocation2 + $0x50] sm:$0x1]  ;;  %v750_v21 = vand.u32 4294901760, %v749_v20  ;;  %v261_v44 = vmul.f32 %v4256_v36, %v4182_v4  ;;  %v262_v46 = vmul.f32 %v4256_v36, %v4180_v3  ;;  %v4280_v49 = vstv %s3100_s22  ;;  %s4290_s25 = sld [smem:[#allocation3 + $0x102]]  ;;  %p4050_p10 = por %p4049_p9, %p4048_p8 }
  0x69   :  { %v263_v51 = vmul.f32 %v4256_v36, %v4199_v11  ;;  %v288_v57 = vrot.slane %v282_v40, 6  ;;  %v290_v58 = vrot.slane %v283_v41, 6  ;;  %v287_v59 = vrot.slane %v281_v42, 6  ;;  %s3115_s26 = sld [smem:[#allocation8 + $0x2]] }
  0x6a   :  { %3416 = vmatprep.subr.mxu1 %v750_v21  ;;  %v4296_v61 = vstv %s4246_s23  ;;  %s3116_s1 = sld [smem:[#allocation8 + $0x1]]  ;;  %p4051_p11 = pnand %p4050_p10, %p4044_p7 }
  0x6b   :  { %314 = vrot.lane.b32.xlu1 %v4182_v4, %s4089_s7  ;;  %312 = vrot.lane.b32.xlu0 %v166_v8, %s4089_s7  ;;  %v4322_v33 = vstv %s4282_s24  ;;  %s1859_s0 = sld [smem:[#allocation8]] }
  0x6c   :  { %3417 = vmatpush3.msra.mxu1 %v750_v21 }
  0x6f   :  { %318 = vrot.lane.b32.xlu1 %v4180_v3, %s4089_s7  ;;  %316 = vrot.lane.b32.xlu0 %v169_v9, %s4089_s7 }
  0x73   :  { %203 = vrot.lane.b32.xlu1 %v174_v10, %s4087_s6  ;;  %201 = vrot.lane.b32.xlu0 %v4199_v11, %s4087_s6 }
  0x77   :  { %310 = vrot.lane.b32.xlu1 %v4188_v7, %s4089_s7  ;;  %308 = vrot.lane.b32.xlu0 %v4204_v12, %s4089_s7 }
  0x7b   :  { %322 = vrot.lane.b32.xlu1 %v4199_v11, %s4089_s7  ;;  %320 = vrot.lane.b32.xlu0 %v172_v13, %s4089_s7  ;;  %v4312_v13 = vstv %s4264_s5 }
  0x7f   :  { %434 = vrot.lane.b32.xlu1 %v168_v1, %s4087_s6  ;;  %428 = vrot.lane.b32.xlu0 %v4188_v7, %s4087_s6  ;;  %v272_v1 = vsel %vm229_vm4, %v270_v47, %v271_v48 }
  0x80   :  { %v277_v23 = vadd.f32 %v272_v1, %v262_v46 }
  0x83   :  { %438 = vrot.lane.b32.xlu1 %v171_v0, %s4087_s6  ;;  %542 = vrot.lane.b32.xlu0 %v166_v8, %s4089_s7  ;;  %v276_v8 = vadd.f32 %v270_v47, %v261_v44 }
  0x87   :  { %430 = vrot.lane.b32.xlu1 %v165_v6, %s4087_s6  ;;  %546 = vrot.lane.b32.xlu0 %v169_v9, %s4089_s7  ;;  %v387_v6 = vrot.slane %v4292_v56, 7  ;;  %v278_v9 = vadd.f32 %v271_v48, %v263_v51 }
  0x89   :  { %v4335_v41 = vsel %vm229_vm4, %v386_v5, %v387_v6 }
  0x8b   :  { %442 = vrot.lane.b32.xlu1 %v419_v16, %s4087_s6  ;;  %440 = vrot.lane.b32.xlu0 %v4222_v17, %s4087_s6  ;;  %v289_v16 = vsel %vm247_vm3, %v287_v59, %v288_v57 }
  0x8c   :  { %v295_v44 = vadd.f32 %v289_v16, %v276_v8  ;;  %v641_v16 = vld [vmem:[#allocation12 + $0x68] sm:$0xff] }
  0x8f   :  { %540 = vrot.lane.b32.xlu1 %v4188_v7, %s4089_s7 }
  0xcf   :  { %v200_v25 = vpop.permute.xlu1 %199  ;;  %v196_v26 = vpop.permute.xlu0 %195 }
  0xd3   :  { %v198_v30 = vpop.permute.xlu1 %197  ;;  %v194_v31 = vpop.permute.xlu0 %193 }
  0xd4   :  { %v208_v34 = vsel %vm205_vm1, %v198_v30, %v200_v25  ;;  %v207_v35 = vsel %vm205_vm1, %v194_v31, %v196_v26  ;;  %v291_v31 = vsel %vm247_vm3, %v288_v57, %v290_v58 }
  0xd5   :  { %v216_v37 = vsel %vm177_vm2, %v208_v34, 0.0  ;;  %v215_v38 = vsel %vm177_vm2, %v207_v35, 0.0  ;;  %v4324_v34 = vadd.f32 %v290_v58, %v278_v9 }
  0xd6   :  { %v4273_v43 = vmul.f32 %v4248_v29, %v216_v37  ;;  %v225_v45 = vmul.f32 %v4248_v29, %v215_v38  ;;  %v4299_v62 = vmul.f32 %v4280_v49, %v216_v37  ;;  %v242_v63 = vmul.f32 %v4280_v49, %v215_v38 }
  0xd7   :  { %v221_v20 = vmul.f32 %v4296_v61, %v216_v37  ;;  %v220_v35 = vmul.f32 %v4296_v61, %v215_v38  ;;  %v4328_v37 = vstv %s4290_s25  ;;  %v296_v38 = vadd.f32 %v291_v31, %v277_v23 }
  0xd8   :  { %v231_v52 = vrot.slane %v4273_v43, 7  ;;  %v230_v53 = vrot.slane %v225_v45, 7  ;;  %v251_v25 = vrot.slane %v4299_v62, 6  ;;  %v249_v26 = vrot.slane %v242_v63, 6 }
  0xd9   :  { %v192_v54 = vpop.permute.xlu1 %191  ;;  %v190_v55 = vpop.permute.xlu0 %189 }
  0xda   :  { %v206_v60 = vsel %vm205_vm1, %v190_v55, %v192_v54  ;;  %v232_v10 = vsel %vm229_vm4, %v230_v53, %v231_v52  ;;  %v236_v48 = vadd.f32 %v230_v53, %v220_v35  ;;  %v252_v51 = vsel %vm247_vm3, %v249_v26, %v251_v25 }
  0xdb   :  { %v214_v0 = vsel %vm177_vm2, %v206_v60, 0.0  ;;  %v237_v32 = vadd.f32 %v232_v10, %v221_v20  ;;  %v642_v60 = vld [vmem:[#allocation12 + $0x70] sm:$0xff] }
  0xdc   :  { %v241_v2 = vmul.f32 %v4280_v49, %v214_v0  ;;  %v4361_v8 = vand.u32 4294901760, %v642_v60 }
  0xdd   :  { %v315_v11 = vpop.permute.xlu1 %314  ;;  %v313_v14 = vpop.permute.xlu0 %312  ;;  %v257_v55 = vadd.f32 %v252_v51, %v237_v32  ;;  %v640_v32 = vld [vmem:[#allocation12 + $0x60] sm:$0xff] }
  0xde   :  { %v248_v21 = vrot.slane %v241_v2, 6  ;;  %v326_v22 = vsel %vm324_vm5, %v313_v14, %v315_v11  ;;  %v4359_v2 = vmul.f32 %v4256_v36, %v4188_v7  ;;  %v4373_v7 = vand.u32 4294901760, %v641_v16  ;;  %3383 = vmatprep.subr.mxu0 %v4361_v8 }
  0xdf   :  { %v334_v30 = vsel %vm299_vm6, %v326_v22, 0.0  ;;  %v4371_v22 = vsub.f32 %v642_v60, %v4361_v8  ;;  %3384 = vmatpush3.msra.mxu0 %v4361_v8 }
  0xe0   :  { %v250_v45 = vsel %vm247_vm3, %v248_v21, %v249_v26  ;;  %v4339_v46 = vmul.f32 %v4312_v13, %v334_v30  ;;  %v4348_v57 = vmul.f32 %v4328_v37, %v334_v30  ;;  %v339_v53 = vmul.f32 %v4322_v33, %v334_v30  ;;  %3385 = vmatprep.subr.mxu0 %v4373_v7 }
  0xe1   :  { %v319_v40 = vpop.permute.xlu1 %318  ;;  %v317_v42 = vpop.permute.xlu0 %316  ;;  %v256_v63 = vadd.f32 %v250_v45, %v236_v48  ;;  %v377_v26 = vadd.f32 %v296_v38, %v257_v55  ;;  %v4383_v45 = vand.u32 4294901760, %v4371_v22  ;;  %v639_v55 = vld [vmem:[#allocation12 + $0x58] sm:$0xff]  ;;  %3386 = vmatpush3.msra.mxu0 %v4373_v7 }
  0xe2   :  { %v327_v47 = vsel %vm324_vm5, %v317_v42, %v319_v40  ;;  %v348_v9 = vrot.slane %v4339_v46, 7  ;;  %v366_v23 = vrot.slane %v4348_v57, 6  ;;  %v4386_v46 = vsub.f32 %v641_v16, %v4373_v7 }
  0xe3   :  { %v335_v54 = vsel %vm299_vm6, %v327_v47, 0.0  ;;  %5289 = vst [vmem:[#allocation27_spill] sm:$0xff] %v4383_v45  ;;  %v4388_v47 = vand.u32 4294901760, %v640_v32  ;;  %v376_v38 = vadd.f32 %v295_v44, %v256_v63 }
  0xe4   :  { %v4351_v58 = vmul.f32 %v4312_v13, %v335_v54  ;;  %v4354_v59 = vmul.f32 %v4328_v37, %v335_v54  ;;  %v340_v20 = vmul.f32 %v4322_v33, %v335_v54  ;;  %v4403_v44 = vand.u32 4294901760, %v4386_v46 }
  0xe5   :  { %v204_v0 = vpop.permute.xlu1 %203  ;;  %v202_v1 = vpop.permute.xlu0 %201  ;;  %3387 = vmatprep.subr.mxu0 %v4388_v47  ;;  %v4410_v63 = vsub.f32 %v640_v32, %v4388_v47  ;;  %v354_v62 = vadd.f32 %v348_v9, %v339_v53 }
  0xe6   :  { %v349_v10 = vrot.slane %v4351_v58, 7  ;;  %v368_v11 = vrot.slane %v4354_v59, 6  ;;  %v209_v14 = vsel %vm205_vm1, %v202_v1, %v204_v0  ;;  %v756_v0 = vsub.f32 %v4371_v22, %v4383_v45  ;;  %5290 = vst [vmem:[#allocation28_spill] sm:$0xff] %v4403_v44  ;;  %3388 = vmatpush3.msra.mxu0 %v4388_v47 }
  0xe7   :  { %v217_v21 = vsel %vm177_vm2, %v209_v14, 0.0  ;;  %v4412_v1 = vand.u32 4294901760, %v639_v55  ;;  %v638_v14 = vld [vmem:[#allocation12 + $0x50] sm:$0xff] }
  0xe8   :  { %v350_v30 = vsel %vm229_vm4, %v348_v9, %v349_v10  ;;  %v222_v31 = vmul.f32 %v4296_v61, %v217_v21  ;;  %v369_v48 = vsel %vm247_vm3, %v366_v23, %v368_v11 }
  0xe9   :  { %v355_v35 = vadd.f32 %v350_v30, %v340_v20  ;;  %v311_v40 = vpop.permute.xlu1 %310  ;;  %v309_v42 = vpop.permute.xlu0 %308  ;;  %v757_v30 = vand.u32 4294901760, %v756_v0  ;;  %3389 = vmatprep.subr.mxu0 %v4412_v1 }
  0xea   :  { %v238_v51 = vadd.f32 %v231_v52, %v222_v31  ;;  %v325_v54 = vsel %vm324_vm5, %v309_v42, %v311_v40  ;;  %v763_v31 = vsub.f32 %v4386_v46, %v4403_v44  ;;  %v4421_v40 = vand.u32 4294901760, %v4410_v63  ;;  %v637_v42 = vld [vmem:[#allocation12 + $0x48] sm:$0xff]  ;;  %3390 = vmatpush3.msra.mxu0 %v4412_v1 }
  0xeb   :  { %v374_v57 = vadd.f32 %v369_v48, %v355_v35  ;;  %v333_v60 = vsel %vm299_vm6, %v325_v54, 0.0  ;;  %v4417_v35 = vand.u32 4294901760, %v638_v14  ;;  %3418 = vmatprep.subr.mxu1 %v757_v30  ;;  %v4428_v54 = vsub.f32 %v639_v55, %v4412_v1 }
  0xec   :  { %v258_v43 = vadd.f32 %v251_v25, %v238_v51  ;;  %v359_v52 = vmul.f32 %v4328_v37, %v333_v60  ;;  %5291 = vst [vmem:[#allocation29_spill] sm:$0xff] %v4421_v40  ;;  %v764_v51 = vand.u32 4294901760, %v763_v31  ;;  %3419 = vmatpush3.msra.mxu1 %v757_v30  ;;  %v636_v60 = vld [vmem:[#allocation12 + $0x40] sm:$0xff] }
  0xed   :  { %v380_v16 = vadd.f32 %v377_v26, %v374_v57  ;;  %v323_v20 = vpop.permute.xlu1 %322  ;;  %v321_v21 = vpop.permute.xlu0 %320  ;;  %v770_v57 = vsub.f32 %v4410_v63, %v4421_v40  ;;  %v4440_v55 = vand.u32 4294901760, %v4428_v54  ;;  %3391 = vmatprep.subr.mxu0 %v4417_v35 }
  0xee   :  { %v365_v25 = vrot.slane %v359_v52, 6  ;;  %v328_v32 = vsel %vm324_vm5, %v321_v21, %v323_v20  ;;  %v378_v0 = vadd.f32 %v4324_v34, %v258_v43  ;;  %3420 = vmatprep.subr.mxu1 %v764_v51  ;;  %v4450_v21 = vand.u32 4294901760, %v636_v60  ;;  %v635_v34 = vld [vmem:[#allocation12 + $0x38] sm:$0xff]  ;;  %3392 = vmatpush3.msra.mxu0 %v4417_v35 }
  0xef   :  { %v393_v26 = vsub.f32 %v380_v16, %v4335_v41  ;;  %v336_v48 = vsel %vm299_vm6, %v328_v32, 0.0  ;;  %v4436_v41 = vsub.f32 %v638_v14, %v4417_v35  ;;  %5292 = vst [vmem:[#allocation30_spill] sm:$0xff] %v4440_v55  ;;  %v4442_v16 = vand.u32 4294901760, %v637_v42  ;;  %3421 = vmatpush3.msra.mxu1 %v764_v51  ;;  %v634_v32 = vld [vmem:[#allocation12 + $0x30] sm:$0xff] }
  0xf0   :  { %v367_v53 = vsel %vm247_vm3, %v365_v25, %v366_v23  ;;  %v341_v9 = vmul.f32 %v4322_v33, %v336_v48  ;;  %v771_v20 = vand.u32 4294901760, %v770_v57  ;;  %v777_v30 = vsub.f32 %v4428_v54, %v4440_v55  ;;  %v633_v57 = vld [vmem:[#allocation12 + $0x28] sm:$0xff] }
  0xf1   :  { %v373_v52 = vadd.f32 %v367_v53, %v354_v62  ;;  %v4448_v14 = vand.u32 4294901760, %v4436_v41  ;;  %v4456_v31 = vsub.f32 %v637_v42, %v4442_v16  ;;  %v4458_v62 = vand.u32 4294901760, %v635_v34  ;;  %3393 = vmatprep.subr.mxu0 %v4442_v16 }
  0xf2   :  { %v356_v23 = vadd.f32 %v349_v10, %v341_v9  ;;  %v400_v58 = vrot.slane %v393_v26, 1  ;;  %3422 = vmatprep.subr.mxu1 %v771_v20  ;;  %3394 = vmatpush3.msra.mxu0 %v4442_v16  ;;  %v778_v48 = vand.u32 4294901760, %v777_v30  ;;  %v4481_v9 = vand.u32 4294901760, %v634_v32 }
  0xf3   :  { %5293 = vst [vmem:[#allocation31_spill] sm:$0xff] %v4448_v14  ;;  %v379_v43 = vadd.f32 %v376_v38, %v373_v52  ;;  %v784_v25 = vsub.f32 %v4436_v41, %v4448_v14  ;;  %v4466_v38 = vsub.f32 %v636_v60, %v4450_v21  ;;  %3423 = vmatpush3.msra.mxu1 %v771_v20  ;;  %v4472_v26 = vand.u32 4294901760, %v4456_v31 }
  0xf4   :  { %v375_v10 = vadd.f32 %v368_v11, %v356_v23  ;;  %v4475_v59 = vsub.f32 %v635_v34, %v4458_v62  ;;  %3395 = vmatprep.subr.mxu0 %v4450_v21  ;;  %3424 = vmatprep.subr.mxu1 %v778_v48  ;;  %v4489_v52 = vand.u32 4294901760, %v633_v57  ;;  %v4497_v20 = vsub.f32 %v634_v32, %v4481_v9 }
  0xf5   :  { %v392_v42 = vsub.f32 %v379_v43, %v386_v5  ;;  %5294 = vst [vmem:[#allocation32_spill] sm:$0xff] %v4472_v26  ;;  %v785_v51 = vand.u32 4294901760, %v784_v25  ;;  %v4479_v53 = vand.u32 4294901760, %v4466_v38  ;;  %3396 = vmatpush3.msra.mxu0 %v4450_v21  ;;  %v791_v5 = vsub.f32 %v4456_v31, %v4472_v26  ;;  %3425 = vmatpush3.msra.mxu1 %v778_v48 }
  0xf6   :  { %v381_v11 = vadd.f32 %v378_v0, %v375_v10  ;;  %v4487_v60 = vand.u32 4294901760, %v4475_v59  ;;  %3397 = vmatprep.subr.mxu0 %v4458_v62  ;;  %v523_v43 = vrot.slane %v4359_v2, 6  ;;  %v4510_v32 = vsub.f32 %v633_v57, %v4489_v52 }
  0xf7   :  { %5295 = vst [vmem:[#allocation33_spill] sm:$0xff] %v4479_v53  ;;  %v399_v50 = vrot.slane %v392_v42, 1  ;;  %v798_v23 = vsub.f32 %v4466_v38, %v4479_v53  ;;  %3398 = vmatpush3.msra.mxu0 %v4458_v62  ;;  %3426 = vmatprep.subr.mxu1 %v785_v51  ;;  %v792_v30 = vand.u32 4294901760, %v791_v5  ;;  %v4516_v5 = vand.u32 4294901760, %v4497_v20 }
  0xf8   :  { %5296 = vst [vmem:[#allocation34_spill] sm:$0xff] %v4487_v60  ;;  %v394_v0 = vsub.f32 %v381_v11, %v387_v6  ;;  %v805_v10 = vsub.f32 %v4475_v59, %v4487_v60  ;;  %3399 = vmatprep.subr.mxu0 %v4481_v9  ;;  %5297 = vst [vmem:[#allocation35_spill] sm:$0xff] %v4510_v32  ;;  %3427 = vmatpush3.msra.mxu1 %v785_v51  ;;  %v629_v60 = vld [vmem:[#allocation12 + $0x8] sm:$0xff] }
  0xf9   :  { %v401_v34 = vsel %vm398_vm7, %v399_v50, %v400_v58  ;;  %v799_v42 = vand.u32 4294901760, %v798_v23  ;;  %3400 = vmatpush3.msra.mxu0 %v4481_v9  ;;  %3428 = vmatprep.subr.mxu1 %v792_v30  ;;  %5298 = vst [vmem:[#allocation36_spill] sm:$0xff] %v4516_v5 }
  0xfa   :  { %v402_v56 = vrot.slane %v394_v0, 1  ;;  %544 = vrot.lane.b32.xlu1 %v401_v34, %s4089_s7  ;;  %v502_v6 = vmul.f32 %v401_v34, %v4241_v27  ;;  %v518_v25 = vmul.f32 %v401_v34, %v4256_v36  ;;  %432 = vrot.lane.b32.xlu0 %v401_v34, %s4087_s6  ;;  %v497_v2 = vmul.f32 %v401_v34, %v4244_v28 }
  0xfb   :  { %3401 = vmatprep.subr.mxu0 %v4489_v52  ;;  %3429 = vmatpush3.msra.mxu1 %v792_v30  ;;  %v806_v51 = vand.u32 4294901760, %v805_v10  ;;  %v812_v10 = vsub.f32 %v4497_v20, %v4516_v5 }
  0xfc   :  { %v403_v48 = vsel %vm398_vm7, %v400_v58, %v402_v56  ;;  %v506_v11 = vrot.slane %v502_v6, 7  ;;  %v524_v50 = vrot.slane %v518_v25, 6  ;;  %v4529_v58 = vand.u32 4294901760, %v4510_v32  ;;  %v632_v56 = vld [vmem:[#allocation12 + $0x20] sm:$0xff]  ;;  %3430 = vmatprep.subr.mxu1 %v799_v42  ;;  %3402 = vmatpush3.msra.mxu0 %v4489_v52 }
  0xfd   :  { %v4520_v0 = vmul.f32 %v403_v48, %v4241_v27  ;;  %v4523_v57 = vmul.f32 %v403_v48, %v4256_v36  ;;  %v631_v36 = vld [vmem:[#allocation12 + $0x18] sm:$0xff]  ;;  %3431 = vmatpush3.msra.mxu1 %v799_v42  ;;  %v628_v42 = vld [vmem:[#allocation12] sm:$0xff] }
  0xfe   :  { %v512_v23 = vadd.f32 %v506_v11, %v497_v2  ;;  %v525_v34 = vsel %vm247_vm3, %v523_v43, %v524_v50  ;;  %548 = vrot.lane.b32.xlu1 %v403_v48, %s4089_s7  ;;  %436 = vrot.lane.b32.xlu0 %v403_v48, %s4087_s6  ;;  %5299 = vst [vmem:[#allocation37_spill] sm:$0xff] %v4529_v58  ;;  %v630_v2 = vld [vmem:[#allocation12 + $0x10] sm:$0xff]  ;;  %v4553_v26 = vand.u32 4294901760, %v631_v36 }
  0xff   :  { %v5229_v6 = vrot.slane %v4520_v0, 7  ;;  %v498_v43 = vmul.f32 %v403_v48, %v4244_v28  ;;  %v819_v25 = vsub.f32 %v4510_v32, %v4529_v58  ;;  %v5300_v53 = vrot.slane %v4523_v57, 6  ;;  %3432 = vmatprep.subr.mxu1 %v806_v51 }
 0x100   :  { %v4534_v30 = vadd.f32 %v525_v34, %v512_v23  ;;  %v4547_v34 = vand.u32 4294901760, %v632_v56  ;;  %v813_v58 = vand.u32 4294901760, %v812_v10  ;;  %3433 = vmatpush3.msra.mxu1 %v806_v51 }
 0x101   :  { %v508_v27 = vsel %vm229_vm4, %v506_v11, %v5229_v6  ;;  %v527_v23 = vsel %vm247_vm3, %v524_v50, %v5300_v53  ;;  %v820_v5 = vand.u32 4294901760, %v819_v25  ;;  %v417_v11 = vld [vmem:[#allocation2 + $0x48] sm:$0x1]  ;;  %v4558_v53 = vand.u32 4294901760, %v630_v2 }
 0x102   :  { %v513_v48 = vadd.f32 %v508_v27, %v498_v43  ;;  %538 = vrot.lane.b32.xlu0 %v4204_v12, %s4089_s7  ;;  %552 = vrot.lane.b32.xlu1 %v4222_v17, %s4089_s7  ;;  %v4556_v6 = vsub.f32 %v632_v56, %v4547_v34  ;;  %v4560_v50 = vand.u32 4294901760, %v629_v60  ;;  %v4566_v12 = vsub.f32 %v631_v36, %v4553_v26 }
 0x103   :  { %5302 = vst [vmem:[#allocation39_spill] sm:$0xff] %v4558_v53  ;;  %3403 = vmatprep.subr.mxu0 %v4547_v34  ;;  %3434 = vmatprep.subr.mxu1 %v813_v58  ;;  %v4568_v43 = vand.u32 4294901760, %v628_v42  ;;  %v4575_v56 = vsub.f32 %v630_v2, %v4558_v53 }
 0x104   :  { %5301 = vst [vmem:[#allocation38_spill] sm:$0xff] %v4556_v6  ;;  %5303 = vst [vmem:[#allocation40_spill] sm:$0xff] %v4560_v50  ;;  %v4563_v27 = vadd.f32 %v527_v23, %v513_v48  ;;  %3404 = vmatpush3.msra.mxu0 %v4547_v34  ;;  %3435 = vmatpush3.msra.mxu1 %v813_v58  ;;  %v4572_v51 = vand.u32 4294901760, %v4556_v6  ;;  %v4578_v10 = vsub.f32 %v629_v60, %v4560_v50 }
 0x105   :  { %5304 = vst [vmem:[#allocation41_spill] sm:$0xff] %v4566_v12  ;;  %5305 = vst [vmem:[#allocation42_spill] sm:$0xff] %v4568_v43  ;;  %3405 = vmatprep.subr.mxu0 %v4553_v26  ;;  %3436 = vmatprep.subr.mxu1 %v820_v5  ;;  %v4583_v36 = vand.u32 4294901760, %v4566_v12  ;;  %v4586_v25 = vsub.f32 %v628_v42, %v4568_v43  ;;  %v4591_v2 = vand.u32 4294901760, %v4575_v56 }
 0x106   :  { %5306 = vst [vmem:[#allocation43_spill] sm:$0xff] %v4572_v51  ;;  %5307 = vst [vmem:[#allocation44_spill] sm:$0xff] %v4575_v56  ;;  %550 = vrot.lane.b32.xlu0 %v417_v11, %s4089_s7  ;;  %3437 = vmatpush3.msra.mxu1 %v820_v5  ;;  %v826_v58 = vsub.f32 %v4556_v6, %v4572_v51  ;;  %v4594_v60 = vand.u32 4294901760, %v4578_v10 }
 0x107   :  { %5308 = vst [vmem:[#allocation45_spill] sm:$0xff] %v4578_v10  ;;  %5309 = vst [vmem:[#allocation46_spill] sm:$0xff] %v4583_v36  ;;  %3406 = vmatpush3.msra.mxu0 %v4553_v26  ;;  %v833_v23 = vsub.f32 %v4566_v12, %v4583_v36  ;;  %v4600_v48 = vand.u32 4294901760, %v4586_v25  ;;  %v840_v42 = vsub.f32 %v4575_v56, %v4591_v2  ;;  %v5314_v12 = vrot.slane %v4520_v0, 7 }
 0x108   :  { %5310 = vst [vmem:[#allocation47_spill] sm:$0xff] %v4586_v25  ;;  %5311 = vst [vmem:[#allocation48_spill] sm:$0xff] %v4591_v2  ;;  %3407 = vmatprep.subr.mxu0 %v4558_v53  ;;  %v827_v5 = vand.u32 4294901760, %v826_v58  ;;  %v847_v11 = vsub.f32 %v4578_v10, %v4594_v60 }
 0x109   :  { %5312 = vst [vmem:[#allocation49_spill] sm:$0xff] %v4594_v60  ;;  %5313 = vst [vmem:[#allocation50_spill] sm:$0xff] %v4600_v48  ;;  %3408 = vmatpush3.msra.mxu0 %v4558_v53  ;;  %v834_v51 = vand.u32 4294901760, %v833_v23  ;;  %v841_v14 = vand.u32 4294901760, %v840_v42  ;;  %v854_v36 = vsub.f32 %v4586_v25, %v4600_v48  ;;  %v435_v42 = vpop.permute.xlu1 %434 }
 0x10a   :  { %3409 = vmatprep.subr.mxu0 %v4560_v50  ;;  %3438 = vmatprep.subr.mxu1 %v827_v5  ;;  %v848_v58 = vand.u32 4294901760, %v847_v11 }
 0x10b   :  { %3410 = vmatpush3.msra.mxu0 %v4560_v50  ;;  %3439 = vmatpush3.msra.mxu1 %v827_v5  ;;  %v855_v23 = vand.u32 4294901760, %v854_v36  ;;  %v429_v5 = vpop.permute.xlu0 %428 }
 0x10c   :  { %3411 = vmatprep.subr.mxu0 %v4568_v43  ;;  %3440 = vmatprep.subr.mxu1 %v834_v51 }
 0x10d   :  { %3412 = vmatpush3.msra.mxu0 %v4568_v43  ;;  %3441 = vmatpush3.msra.mxu1 %v834_v51  ;;  %v439_v48 = vpop.permute.xlu1 %438 }
 0x10e   :  { %3451 = vmatprep.subr.mxu0 %v4225_v18  ;;  %3442 = vmatprep.subr.mxu1 %v841_v14 }
 0x10f   :  { %3443 = vmatpush3.msra.mxu1 %v841_v14  ;;  %v543_v60 = vpop.permute.xlu0 %542 }
 0x110   :  { %3444 = vmatprep.subr.mxu1 %v848_v58 }
 0x111   :  { %3445 = vmatpush3.msra.mxu1 %v848_v58  ;;  %v431_v2 = vpop.permute.xlu1 %430 }
 0x112   :  { %3446 = vmatprep.subr.mxu1 %v855_v23  ;;  %v444_v51 = vsel %vm205_vm1, %v429_v5, %v431_v2  ;;  %v499_v5 = vmul.f32 %v4222_v17, %v4244_v28 }
 0x113   :  { %3447 = vmatpush3.msra.mxu1 %v855_v23  ;;  %v547_v55 = vpop.permute.xlu0 %546  ;;  %v452_v14 = vsel %vm177_vm2, %v444_v51, 0.0 }
 0x114   :  { %3486 = vmatprep.subr.mxu1 %v4220_v15  ;;  %v478_v36 = vmul.f32 %v452_v14, %v4322_v33  ;;  %v514_v43 = vadd.f32 %v5314_v12, %v499_v5 }
 0x115   :  { %v443_v11 = vpop.permute.xlu1 %442 }
 0x116   :  { %v484_v51 = vrot.slane %v478_v36, 6 }
 0x117   :  { %v441_v44 = vpop.permute.xlu0 %440 }
 0x118   :  { %v447_v45 = vsel %vm205_vm1, %v441_v44, %v443_v11 }
 0x119   :  { %v541_v40 = vpop.permute.xlu1 %540  ;;  %v455_v14 = vsel %vm177_vm2, %v447_v45, 0.0 }
 0x11a   :  { %v460_v6 = vmul.f32 %v455_v14, %v4328_v37 }
 0x16c   :  { %v545_v58 = vpop.permute.xlu1 %544  ;;  %v433_v23 = vpop.permute.xlu0 %432 }
 0x16d   :  { %v555_v19 = vsel %vm324_vm5, %v543_v60, %v545_v58  ;;  %v445_v25 = vsel %vm205_vm1, %v433_v23, %v435_v42 }
 0x16e   :  { %v563_v10 = vsel %vm299_vm6, %v555_v19, 0.0  ;;  %v453_v2 = vsel %vm177_vm2, %v445_v25, 0.0 }
 0x16f   :  { %v573_v56 = vmul.f32 %v563_v10, %v4248_v29  ;;  %v463_v44 = vmul.f32 %v453_v2, %v4312_v13  ;;  %v479_v60 = vmul.f32 %v453_v2, %v4322_v33  ;;  %v589_v19 = vmul.f32 %v563_v10, %v4296_v61 }
 0x170   :  { %v549_v42 = vpop.permute.xlu1 %548  ;;  %v437_v11 = vpop.permute.xlu0 %436  ;;  %v458_v58 = vmul.f32 %v453_v2, %v4328_v37  ;;  %v568_v50 = vmul.f32 %v563_v10, %v4280_v49 }
 0x171   :  { %v556_v25 = vsel %vm324_vm5, %v547_v55, %v549_v42  ;;  %v446_v17 = vsel %vm205_vm1, %v437_v11, %v439_v48  ;;  %v467_v28 = vrot.slane %v463_v44, 7  ;;  %v485_v36 = vrot.slane %v479_v60, 6 }
 0x172   :  { %v564_v45 = vsel %vm299_vm6, %v556_v25, 0.0  ;;  %v454_v23 = vsel %vm177_vm2, %v446_v17, 0.0  ;;  %v577_v55 = vrot.slane %v573_v56, 7  ;;  %v595_v12 = vrot.slane %v589_v19, 6 }
 0x173   :  { %v574_v2 = vmul.f32 %v564_v45, %v4248_v29  ;;  %v473_v42 = vadd.f32 %v467_v28, %v458_v58  ;;  %v590_v48 = vmul.f32 %v564_v45, %v4296_v61  ;;  %v464_v44 = vmul.f32 %v454_v23, %v4312_v13 }
 0x174   :  { %v539_v60 = vpop.permute.xlu0 %538  ;;  %v486_v11 = vsel %vm247_vm3, %v484_v51, %v485_v36  ;;  %v480_v25 = vmul.f32 %v454_v23, %v4322_v33  ;;  %v569_v5 = vmul.f32 %v564_v45, %v4280_v49  ;;  %v553_v56 = vpop.permute.xlu1 %552  ;;  %v459_v13 = vmul.f32 %v454_v23, %v4328_v37 }
 0x175   :  { %v578_v24 = vrot.slane %v574_v2, 7  ;;  %v554_v0 = vsel %vm324_vm5, %v539_v60, %v541_v40  ;;  %v468_v10 = vrot.slane %v464_v44, 7  ;;  %v492_v17 = vadd.f32 %v486_v11, %v473_v42 }
 0x176   :  { %v562_v29 = vsel %vm299_vm6, %v554_v0, 0.0  ;;  %v487_v58 = vrot.slane %v480_v25, 6  ;;  %v597_v2 = vrot.slane %v590_v48, 6  ;;  %v583_v0 = vadd.f32 %v577_v55, %v568_v50 }
 0x177   :  { %v579_v14 = vsel %vm229_vm4, %v577_v55, %v578_v24  ;;  %v588_v51 = vmul.f32 %v562_v29, %v4296_v61  ;;  %v469_v33 = vsel %vm229_vm4, %v467_v28, %v468_v10  ;;  %v475_v40 = vadd.f32 %v468_v10, %v460_v6 }
 0x178   :  { %v551_v19 = vpop.permute.xlu0 %550  ;;  %v584_v60 = vadd.f32 %v579_v14, %v569_v5  ;;  %v474_v45 = vadd.f32 %v469_v33, %v459_v13  ;;  %v488_v53 = vsel %vm247_vm3, %v485_v36, %v487_v58  ;;  %v605_v6 = vadd.f32 %v4534_v30, %v492_v17 }
 0x179   :  { %v594_v44 = vrot.slane %v588_v51, 6  ;;  %v557_v32 = vsel %vm324_vm5, %v551_v19, %v553_v56  ;;  %v494_v25 = vadd.f32 %v487_v58, %v475_v40  ;;  %v598_v28 = vsel %vm247_vm3, %v595_v12, %v597_v2 }
 0x17a   :  { %v565_v37 = vsel %vm299_vm6, %v557_v32, 0.0  ;;  %v493_v23 = vadd.f32 %v488_v53, %v474_v45  ;;  %v5315_v11 = vrot.slane %v4523_v57, 6  ;;  %v603_v50 = vadd.f32 %v598_v28, %v584_v60  ;;  %v5339_v45 = vld [vmem:[#allocation49_spill] sm:$0xff] }
 0x17b   :  { %v596_v61 = vsel %vm247_vm3, %v594_v44, %v595_v12  ;;  %v570_v42 = vmul.f32 %v565_v37, %v4280_v49  ;;  %v5340_v44 = vld [vmem:[#allocation50_spill] sm:$0xff] }
 0x17c   :  { %v602_v48 = vadd.f32 %v596_v61, %v583_v0  ;;  %v533_v5 = vadd.f32 %v5315_v11, %v514_v43  ;;  %v606_v36 = vadd.f32 %v4563_v27, %v493_v23  ;;  %v1328_v0 = vld [vmem:[#allocation15] sm:$0xff] }
 0x17d   :  { %v585_v55 = vadd.f32 %v578_v24, %v570_v42  ;;  %v1332_v37 = vsel %vm1330_vm8, %v1328_v0, 0 }
 0x17e   :  { %v608_v39 = vadd.f32 %v605_v6, %v602_v48  ;;  %v607_v32 = vadd.f32 %v533_v5, %v494_v25  ;;  %v609_v53 = vadd.f32 %v606_v36, %v603_v50  ;;  %v4818_v23 = vand.u32 4294901760, %v1332_v37  ;;  %v1329_v48 = vld [vmem:[#allocation15 + $0x8] sm:$0xff] }
 0x17f   :  { %v604_v10 = vadd.f32 %v597_v2, %v585_v55  ;;  %v1335_v50 = vsel %vm1330_vm8, %v1329_v48, 0  ;;  %v1874_v48 = vld [vmem:[#allocation13 + $0x48] sm:$0xff] }
 0x180   :  { %v613_v29 = vmul.f32 0.1, %v608_v39  ;;  %v614_v56 = vmul.f32 0.1, %v609_v53  ;;  %v4821_v25 = vsub.f32 %v1332_v37, %v4818_v23  ;;  %v4829_v55 = vand.u32 4294901760, %v1335_v50 }
 0x181   :  { %v610_v14 = vadd.f32 %v607_v32, %v604_v10 }
 0x182   :  { %v619_v49 = vrot.slane %v613_v29, 1  ;;  %v620_v13 = vrot.slane %v614_v56, 1  ;;  %v1406_v61 = vand.u32 4294901760, %v4821_v25 }
 0x183   :  { %v615_v30 = vmul.f32 0.1, %v610_v14  ;;  %v1415_v14 = vsub.f32 %v1335_v50, %v4829_v55 }
 0x184   :  { %v621_v12 = vsel %vm398_vm7, %v619_v49, %v620_v13  ;;  %v1407_v42 = vsub.f32 %v4821_v25, %v1406_v61 }
 0x185   :  { %v622_v58 = vrot.slane %v615_v30, 1  ;;  %v626_v57 = vsub.f32 %v4182_v4, %v621_v12 }
 0x186   :  { %v1408_v6 = vand.u32 4294901760, %v1407_v42 }
 0x187   :  { %v623_v43 = vsel %vm398_vm7, %v620_v13, %v622_v58  ;;  %v4673_v51 = vand.u32 4294901760, %v626_v57  ;;  %v1416_v58 = vand.u32 4294901760, %v1415_v14 }
 0x188   :  { %v627_v27 = vsub.f32 %v4180_v3, %v623_v43 }
 0x189   :  { %3448 = vmatprep.mubr.f32.mxu1 %v4673_v51  ;;  %v726_v17 = vsub.f32 %v626_v57, %v4673_v51 }
 0x18a   :  { %v4677_v24 = vand.u32 4294901760, %v627_v27 }
 0x18b   :  { %v727_v2 = vand.u32 4294901760, %v726_v17 }
 0x18c   :  { %3449 = vmatmul.mubr.f32.vlgmr.msra.gmra.mxu1 %v4677_v24  ;;  %v4682_v33 = vsub.f32 %v627_v27, %v4677_v24 }
 0x18d   :  { %3487 = vmatpush3.msra.mxu1 %v4220_v15  ;;  %3518 = vmatprep.mubr.f32.mxu1 %v727_v2  ;;  %v728_v4 = vsub.f32 %v726_v17, %v727_v2  ;;  %v1417_v2 = vsub.f32 %v1415_v14, %v1416_v58 }
 0x18e   :  { %3488 = vmatprep.subr.mxu1 %v4361_v8  ;;  %v737_v3 = vand.u32 4294901760, %v4682_v33 }
 0x18f   :  { %3489 = vmatpush3.msra.mxu1 %v4361_v8  ;;  %v729_v40 = vand.u32 4294901760, %v728_v4 }
 0x190   :  { %3490 = vmatprep.subr.mxu1 %v4373_v7  ;;  %v738_v19 = vsub.f32 %v4682_v33, %v737_v3 }
 0x191   :  { %3491 = vmatpush3.msra.mxu1 %v4373_v7  ;;  %3413 = vmatprep.mubr.f32.mxu0 %v729_v40 }
 0x192   :  { %3492 = vmatprep.subr.mxu1 %v4388_v47  ;;  %v739_v60 = vand.u32 4294901760, %v738_v19 }
 0x193   :  { %3493 = vmatpush3.msra.mxu1 %v4388_v47 }
 0x194   :  { %3494 = vmatprep.subr.mxu1 %v4412_v1  ;;  %3414 = vmatmul.mubr.f32.vlgmr.msra.gmra.mxu0 %v739_v60  ;;  %v1418_v60 = vand.u32 4294901760, %v1417_v2  ;;  %v1870_v2 = vld [vmem:[#allocation13 + $0x28] sm:$0xff] }
 0x195   :  { %3452 = vmatpush3.msra.mxu0 %v4225_v18  ;;  %3495 = vmatpush3.msra.mxu1 %v4412_v1  ;;  %v5316_v18 = vld [vmem:[#allocation39_spill] sm:$0xff] }
 0x196   :  { %3453 = vmatprep.subr.mxu0 %v4371_v22  ;;  %3483 = vmatprep.mubr.f32.mxu0 %v726_v17 }
 0x197   :  { %3496 = vmatprep.subr.mxu1 %v4417_v35  ;;  %3454 = vmatpush3.msra.mxu0 %v4371_v22  ;;  %v5317_v22 = vld [vmem:[#allocation35_spill] sm:$0xff] }
 0x198   :  { %3497 = vmatpush3.msra.mxu1 %v4417_v35  ;;  %3455 = vmatprep.subr.mxu0 %v4386_v46 }
 0x199   :  { %3498 = vmatprep.subr.mxu1 %v4442_v16  ;;  %3456 = vmatpush3.msra.mxu0 %v4386_v46  ;;  %v5318_v46 = vld [vmem:[#allocation40_spill] sm:$0xff] }
 0x19a   :  { %3499 = vmatpush3.msra.mxu1 %v4442_v16  ;;  %3457 = vmatprep.subr.mxu0 %v4410_v63 }
 0x19b   :  { %3500 = vmatprep.subr.mxu1 %v4450_v21  ;;  %3458 = vmatpush3.msra.mxu0 %v4410_v63  ;;  %v5319_v63 = vld [vmem:[#allocation38_spill] sm:$0xff] }
 0x19c   :  { %3501 = vmatpush3.msra.mxu1 %v4450_v21  ;;  %3459 = vmatprep.subr.mxu0 %v4428_v54 }
 0x19d   :  { %3502 = vmatprep.subr.mxu1 %v4458_v62  ;;  %3460 = vmatpush3.msra.mxu0 %v4428_v54  ;;  %v5320_v54 = vld [vmem:[#allocation42_spill] sm:$0xff] }
 0x19e   :  { %3503 = vmatpush3.msra.mxu1 %v4458_v62  ;;  %3461 = vmatprep.subr.mxu0 %v4436_v41 }
 0x19f   :  { %3504 = vmatprep.subr.mxu1 %v4481_v9  ;;  %3462 = vmatpush3.msra.mxu0 %v4436_v41  ;;  %v5321_v41 = vld [vmem:[#allocation41_spill] sm:$0xff] }
 0x1a0   :  { %3505 = vmatpush3.msra.mxu1 %v4481_v9  ;;  %3463 = vmatprep.subr.mxu0 %v4456_v31 }
 0x1a1   :  { %3506 = vmatprep.subr.mxu1 %v4489_v52  ;;  %3464 = vmatpush3.msra.mxu0 %v4456_v31  ;;  %v5322_v31 = vld [vmem:[#allocation44_spill] sm:$0xff] }
 0x1a2   :  { %3507 = vmatpush3.msra.mxu1 %v4489_v52  ;;  %3465 = vmatprep.subr.mxu0 %v4466_v38 }
 0x1a3   :  { %3508 = vmatprep.subr.mxu1 %v4547_v34  ;;  %3466 = vmatpush3.msra.mxu0 %v4466_v38  ;;  %v5323_v38 = vld [vmem:[#allocation45_spill] sm:$0xff] }
 0x1a4   :  { %3509 = vmatpush3.msra.mxu1 %v4547_v34  ;;  %3467 = vmatprep.subr.mxu0 %v4475_v59 }
 0x1a5   :  { %3510 = vmatprep.subr.mxu1 %v4553_v26  ;;  %3468 = vmatpush3.msra.mxu0 %v4475_v59  ;;  %v5324_v59 = vld [vmem:[#allocation47_spill] sm:$0xff] }
 0x1a6   :  { %3511 = vmatpush3.msra.mxu1 %v4553_v26  ;;  %3469 = vmatprep.subr.mxu0 %v4497_v20 }
 0x1a7   :  { %3512 = vmatprep.subr.mxu1 %v5316_v18  ;;  %3470 = vmatpush3.msra.mxu0 %v4497_v20  ;;  %v5336_v20 = vld [vmem:[#allocation43_spill] sm:$0xff] }
 0x1a8   :  { %3513 = vmatpush3.msra.mxu1 %v5316_v18  ;;  %3471 = vmatprep.subr.mxu0 %v5317_v22 }
 0x1a9   :  { %3514 = vmatprep.subr.mxu1 %v5318_v46  ;;  %3472 = vmatpush3.msra.mxu0 %v5317_v22 }
 0x1aa   :  { %3515 = vmatpush3.msra.mxu1 %v5318_v46  ;;  %3473 = vmatprep.subr.mxu0 %v5319_v63 }
 0x1ab   :  { %3516 = vmatprep.subr.mxu1 %v5320_v54  ;;  %3474 = vmatpush3.msra.mxu0 %v5319_v63 }
 0x1ac   :  { %3517 = vmatpush3.msra.mxu1 %v5320_v54  ;;  %3475 = vmatprep.subr.mxu0 %v5321_v41 }
 0x1ad   :  { %3519 = vmatmul.mubr.f32.vlgmr.msra.gmra.mxu1 %v737_v3  ;;  %3556 = vmatprep.subr.mxu1 %v4220_v15 }
 0x1ae   :  { %3476 = vmatpush3.msra.mxu0 %v5321_v41  ;;  %3557 = vmatpush3.msra.mxu1 %v4220_v15  ;;  %v5325_v15 = vld [vmem:[#allocation26_spill] sm:$0xff] }
 0x1af   :  { %3588 = vmatprep.mubr.f32.mxu1 %v4673_v51  ;;  %3477 = vmatprep.subr.mxu0 %v5322_v31 }
 0x1b0   :  { %3558 = vmatprep.subr.mxu1 %v4361_v8  ;;  %3478 = vmatpush3.msra.mxu0 %v5322_v31 }
 0x1b1   :  { %3559 = vmatpush3.msra.mxu1 %v4361_v8  ;;  %3479 = vmatprep.subr.mxu0 %v5323_v38  ;;  %v5326_v8 = vld [vmem:[#allocation27_spill] sm:$0xff] }
 0x1b2   :  { %3560 = vmatprep.subr.mxu1 %v4373_v7  ;;  %3480 = vmatpush3.msra.mxu0 %v5323_v38  ;;  %v1880_v38 = vld [vmem:[#allocation13 + $0x78] sm:$0xff] }
 0x1b3   :  { %3561 = vmatpush3.msra.mxu1 %v4373_v7  ;;  %3481 = vmatprep.subr.mxu0 %v5324_v59  ;;  %v5327_v7 = vld [vmem:[#allocation28_spill] sm:$0xff] }
 0x1b4   :  { %3562 = vmatprep.subr.mxu1 %v4388_v47  ;;  %3482 = vmatpush3.msra.mxu0 %v5324_v59  ;;  %v4840_v59 = vand.u32 4294901760, %v1880_v38 }
 0x1b5   :  { %3563 = vmatpush3.msra.mxu1 %v4388_v47  ;;  %3484 = vmatmul.mubr.f32.vlgmr.msra.gmra.mxu0 %v4682_v33  ;;  %v5328_v47 = vld [vmem:[#allocation29_spill] sm:$0xff] }
 0x1b6   :  { %3521 = vmatprep.subr.mxu0 %v5325_v15  ;;  %3564 = vmatprep.subr.mxu1 %v4412_v1 }
 0x1b7   :  { %3522 = vmatpush3.msra.mxu0 %v5325_v15  ;;  %3553 = vmatprep.mubr.f32.mxu0 %v4673_v51  ;;  %v1879_v15 = vld [vmem:[#allocation13 + $0x70] sm:$0xff] }
 0x1b8   :  { %3565 = vmatpush3.msra.mxu1 %v4412_v1  ;;  %3523 = vmatprep.subr.mxu0 %v5326_v8  ;;  %v5329_v1 = vld [vmem:[#allocation30_spill] sm:$0xff] }
 0x1b9   :  { %3566 = vmatprep.subr.mxu1 %v4417_v35  ;;  %3524 = vmatpush3.msra.mxu0 %v5326_v8  ;;  %v4843_v8 = vsub.f32 %v1880_v38, %v4840_v59 }
 0x1ba   :  { %3567 = vmatpush3.msra.mxu1 %v4417_v35  ;;  %3525 = vmatprep.subr.mxu0 %v5327_v7  ;;  %v5330_v35 = vld [vmem:[#allocation31_spill] sm:$0xff] }
 0x1bb   :  { %3568 = vmatprep.subr.mxu1 %v4442_v16  ;;  %3526 = vmatpush3.msra.mxu0 %v5327_v7  ;;  %v4845_v7 = vand.u32 4294901760, %v1879_v15 }
 0x1bc   :  { %3569 = vmatpush3.msra.mxu1 %v4442_v16  ;;  %3527 = vmatprep.subr.mxu0 %v5328_v47  ;;  %v5331_v16 = vld [vmem:[#allocation32_spill] sm:$0xff] }
 0x1bd   :  { %3570 = vmatprep.subr.mxu1 %v4450_v21  ;;  %3528 = vmatpush3.msra.mxu0 %v5328_v47  ;;  %v1878_v47 = vld [vmem:[#allocation13 + $0x68] sm:$0xff] }
 0x1be   :  { %3571 = vmatpush3.msra.mxu1 %v4450_v21  ;;  %3529 = vmatprep.subr.mxu0 %v5329_v1  ;;  %v5332_v21 = vld [vmem:[#allocation33_spill] sm:$0xff] }
 0x1bf   :  { %3572 = vmatprep.subr.mxu1 %v4458_v62  ;;  %3530 = vmatpush3.msra.mxu0 %v5329_v1  ;;  %v4850_v1 = vand.u32 4294901760, %v4843_v8 }
 0x1c0   :  { %3573 = vmatpush3.msra.mxu1 %v4458_v62  ;;  %3531 = vmatprep.subr.mxu0 %v5330_v35  ;;  %v5333_v62 = vld [vmem:[#allocation34_spill] sm:$0xff] }
 0x1c1   :  { %3574 = vmatprep.subr.mxu1 %v4481_v9  ;;  %3532 = vmatpush3.msra.mxu0 %v5330_v35  ;;  %v4853_v35 = vsub.f32 %v1879_v15, %v4845_v7 }
 0x1c2   :  { %3575 = vmatpush3.msra.mxu1 %v4481_v9  ;;  %3533 = vmatprep.subr.mxu0 %v5331_v16  ;;  %v5334_v9 = vld [vmem:[#allocation36_spill] sm:$0xff] }
 0x1c3   :  { %3576 = vmatprep.subr.mxu1 %v4489_v52  ;;  %3534 = vmatpush3.msra.mxu0 %v5331_v16  ;;  %v4855_v16 = vand.u32 4294901760, %v1878_v47 }
 0x1c4   :  { %3577 = vmatpush3.msra.mxu1 %v4489_v52  ;;  %3535 = vmatprep.subr.mxu0 %v5332_v21  ;;  %v5335_v52 = vld [vmem:[#allocation37_spill] sm:$0xff] }
 0x1c5   :  { %3578 = vmatprep.subr.mxu1 %v4547_v34  ;;  %3536 = vmatpush3.msra.mxu0 %v5332_v21  ;;  %v1877_v21 = vld [vmem:[#allocation13 + $0x60] sm:$0xff] }
 0x1c6   :  { %3579 = vmatpush3.msra.mxu1 %v4547_v34  ;;  %3537 = vmatprep.subr.mxu0 %v5333_v62  ;;  %v5338_v34 = vld [vmem:[#allocation48_spill] sm:$0xff] }
 0x1c7   :  { %3580 = vmatprep.subr.mxu1 %v4553_v26  ;;  %3538 = vmatpush3.msra.mxu0 %v5333_v62  ;;  %v1986_v62 = vsub.f32 %v4843_v8, %v4850_v1 }
 0x1c8   :  { %3581 = vmatpush3.msra.mxu1 %v4553_v26  ;;  %3539 = vmatprep.subr.mxu0 %v5334_v9  ;;  %v5337_v26 = vld [vmem:[#allocation46_spill] sm:$0xff] }
 0x1c9   :  { %3582 = vmatprep.subr.mxu1 %v5316_v18  ;;  %3540 = vmatpush3.msra.mxu0 %v5334_v9  ;;  %v4862_v9 = vand.u32 4294901760, %v4853_v35 }
 0x1ca   :  { %3583 = vmatpush3.msra.mxu1 %v5316_v18  ;;  %3541 = vmatprep.subr.mxu0 %v5335_v52 }
 0x1cb   :  { %3584 = vmatprep.subr.mxu1 %v5318_v46  ;;  %3542 = vmatpush3.msra.mxu0 %v5335_v52  ;;  %v4865_v52 = vsub.f32 %v1878_v47, %v4855_v16 }
 0x1cc   :  { %3585 = vmatpush3.msra.mxu1 %v5318_v46  ;;  %3543 = vmatprep.subr.mxu0 %v5336_v20 }
 0x1cd   :  { %3586 = vmatprep.subr.mxu1 %v5320_v54  ;;  %3544 = vmatpush3.msra.mxu0 %v5336_v20  ;;  %v4867_v20 = vand.u32 4294901760, %v1877_v21 }
 0x1ce   :  { %3587 = vmatpush3.msra.mxu1 %v5320_v54  ;;  %3545 = vmatprep.subr.mxu0 %v5337_v26 }
 0x1cf   :  { %3589 = vmatmul.mubr.f32.vlgmr.msra.gmra.mxu1 %v4677_v24  ;;  %3546 = vmatpush3.msra.mxu0 %v5337_v26  ;;  %v1876_v26 = vld [vmem:[#allocation13 + $0x58] sm:$0xff]  ;;  %v4877_v0 = vsub.f32 %v1877_v21, %v4867_v20 }
 0x1d0   :  { %3547 = vmatprep.subr.mxu0 %v5338_v34  ;;  %3602 = vmatprep.mubr.f32.mxu1 %v4818_v23  ;;  %v4880_v37 = vand.u32 4294901760, %v1876_v26 }
 0x1d1   :  { %3548 = vmatpush3.msra.mxu0 %v5338_v34  ;;  %v1987_v34 = vand.u32 4294901760, %v1986_v62  ;;  %v4886_v42 = vand.u32 4294901760, %v4877_v0  ;;  %v1867_v62 = vld [vmem:[#allocation13 + $0x10] sm:$0xff] }
 0x1d2   :  { %3549 = vmatprep.subr.mxu0 %v5339_v45 }
 0x1d3   :  { %3550 = vmatpush3.msra.mxu0 %v5339_v45  ;;  %v1993_v45 = vsub.f32 %v4853_v35, %v4862_v9 }
 0x1d4   :  { %3551 = vmatprep.subr.mxu0 %v5340_v44 }
 0x1d5   :  { %3552 = vmatpush3.msra.mxu0 %v5340_v44  ;;  %v4874_v44 = vand.u32 4294901760, %v4865_v52 }
 0x1d6   :  { %3554 = vmatmul.mubr.f32.vlgmr.msra.gmra.mxu0 %v4677_v24 }
 0x1d7   :  { %3595 = vmatprep.mubr.f32.mxu0 %v1408_v6 }
 0x24c   :  { %v3450_v11 = vpop.f32.mrf.mxu1 }
 0x24e   :  { %v892_v39 = vpop.f32.mrf.mxu1 }
 0x254   :  { %v3415_v28 = vpop.f32.mrf.mxu0 }
 0x255   :  { %v899_v32 = vadd.f32 %v3450_v11, %v3415_v28  ;;  %v4891_v28 = vsub.f32 %v1876_v26, %v4880_v37 }
 0x256   :  { %v731_v5 = vpop.f32.mrf.mxu0 }
 0x257   :  { %v893_v29 = vadd.f32 %v892_v39, %v731_v5  ;;  %v2007_v5 = vsub.f32 %v4877_v0, %v4886_v42  ;;  %v1873_v39 = vld [vmem:[#allocation13 + $0x40] sm:$0xff] }
 0x26d   :  { %v3520_v53 = vpop.f32.mrf.mxu1 }
 0x26f   :  { %v1098_v13 = vpop.f32.mrf.mxu1 }
 0x275   :  { %v3485_v36 = vpop.f32.mrf.mxu0 }
 0x276   :  { %v1010_v56 = vadd.f32 %v3485_v36, %v899_v32  ;;  %v4899_v36 = vand.u32 4294901760, %v1874_v48  ;;  %v2008_v32 = vand.u32 4294901760, %v2007_v5 }
 0x277   :  { %v1002_v10 = vpop.f32.mrf.mxu0 }
 0x278   :  { %v1003_v49 = vadd.f32 %v1002_v10, %v893_v29  ;;  %v1107_v30 = vadd.f32 %v3520_v53, %v1010_v56  ;;  %v4910_v10 = vsub.f32 %v1874_v48, %v4899_v36  ;;  %v4912_v29 = vand.u32 4294901760, %v1873_v39 }
 0x27a   :  { %v1099_v51 = vadd.f32 %v1098_v13, %v1003_v49  ;;  %v4921_v13 = vand.u32 4294901760, %v4910_v10 }
 0x28f   :  { %v3590_v12 = vpop.f32.mrf.mxu1 }
 0x291   :  { %v1318_v33 = vpop.f32.mrf.mxu1 }
 0x296   :  { %v3555_v57 = vpop.f32.mrf.mxu0 }
 0x297   :  { %v1232_v43 = vadd.f32 %v3555_v57, %v1107_v30  ;;  %v4924_v30 = vsub.f32 %v1873_v39, %v4912_v29  ;;  %v1871_v57 = vld [vmem:[#allocation13 + $0x30] sm:$0xff] }
 0x298   :  { %v1225_v27 = vpop.f32.mrf.mxu0 }
 0x299   :  { %v1325_v24 = vadd.f32 %v3590_v12, %v1232_v43  ;;  %v1226_v17 = vadd.f32 %v1225_v27, %v1099_v51  ;;  %v2028_v51 = vsub.f32 %v4910_v10, %v4921_v13  ;;  %v4933_v27 = vand.u32 4294901760, %v4924_v30 }
 0x29b   :  { %v1366_v4 = vand.u32 4294901760, %v1325_v24  ;;  %v1319_v3 = vadd.f32 %v1318_v33, %v1226_v17  ;;  %5341 = vst [vmem:[#allocation39_spill] sm:$0xff] %v4933_v27  ;;  %v4939_v17 = vand.u32 4294901760, %v1871_v57  ;;  %v2029_v33 = vand.u32 4294901760, %v2028_v51 }
 0x29d   :  { %v1454_v40 = vsub.f32 %v1325_v24, %v1366_v4  ;;  %v1369_v19 = vand.u32 4294901760, %v1319_v3  ;;  %3591 = vmatprep.subr.mxu0 %v1366_v4 }
 0x29e   :  { %3592 = vmatpush3.msra.mxu0 %v1366_v4 }
 0x29f   :  { %v1461_v18 = vsub.f32 %v1319_v3, %v1369_v19  ;;  %3593 = vmatprep.subr.mxu0 %v1369_v19  ;;  %v1455_v22 = vand.u32 4294901760, %v1454_v40 }
 0x2a0   :  { %3594 = vmatpush3.msra.mxu0 %v1369_v19 }
 0x2a1   :  { %3605 = vmatprep.subr.mxu0 %v1454_v40  ;;  %3596 = vmatmul.mubr.f32.vlgmr.msra.gmra.mxu0 %v1418_v60  ;;  %v1456_v46 = vsub.f32 %v1454_v40, %v1455_v22  ;;  %v1462_v63 = vand.u32 4294901760, %v1461_v18  ;;  %v1869_v60 = vld [vmem:[#allocation13 + $0x20] sm:$0xff] }
 0x2a2   :  { %3606 = vmatpush3.msra.mxu0 %v1454_v40  ;;  %3609 = vmatprep.mubr.f32.mxu0 %v4821_v25  ;;  %v1994_v25 = vand.u32 4294901760, %v1993_v45  ;;  %v4949_v40 = vsub.f32 %v1871_v57, %v4939_v17  ;;  %v4984_v45 = vand.u32 4294901760, %v1867_v62 }
 0x2a3   :  { %3607 = vmatprep.subr.mxu0 %v1461_v18  ;;  %v1457_v54 = vand.u32 4294901760, %v1456_v46  ;;  %v1463_v41 = vsub.f32 %v1461_v18, %v1462_v63  ;;  %v4956_v46 = vand.u32 4294901760, %v1869_v60 }
 0x2a4   :  { %3608 = vmatpush3.msra.mxu0 %v1461_v18  ;;  %v4996_v5 = vsub.f32 %v1867_v62, %v4984_v45 }
 0x2a5   :  { %3598 = vmatprep.subr.mxu1 %v1457_v54  ;;  %3619 = vmatprep.subr.mxu0 %v1455_v22  ;;  %v1464_v31 = vand.u32 4294901760, %v1463_v41  ;;  %v1868_v41 = vld [vmem:[#allocation13 + $0x18] sm:$0xff]  ;;  %v4967_v38 = vsub.f32 %v1869_v60, %v4956_v46 }
 0x2a6   :  { %3599 = vmatpush3.msra.mxu1 %v1457_v54  ;;  %3610 = vmatmul.mubr.f32.vlgmr.msra.gmra.mxu0 %v1415_v14  ;;  %v1872_v14 = vld [vmem:[#allocation13 + $0x38] sm:$0xff]  ;;  %v4969_v15 = vand.u32 4294901760, %v1868_v41 }
 0x2a7   :  { %3620 = vmatpush3.msra.mxu0 %v1455_v22  ;;  %3600 = vmatprep.subr.mxu1 %v1464_v31  ;;  %v4979_v26 = vand.u32 4294901760, %v4967_v38 }
 0x2a8   :  { %3621 = vmatprep.subr.mxu0 %v1462_v63  ;;  %3601 = vmatpush3.msra.mxu1 %v1464_v31 }
 0x2a9   :  { %3622 = vmatpush3.msra.mxu0 %v1462_v63  ;;  %3603 = vmatmul.mubr.f32.vlgmr.msra.gmra.mxu1 %v4829_v55  ;;  %v4960_v63 = vand.u32 4294901760, %v4949_v40  ;;  %5345 = vst [vmem:[#allocation42_spill] sm:$0xff] %v4979_v26  ;;  %v2063_v48 = vsub.f32 %v4967_v38, %v4979_v26 }
 0x2aa   :  { %3612 = vmatprep.subr.mxu1 %v1366_v4  ;;  %3616 = vmatprep.mubr.f32.mxu1 %v1406_v61  ;;  %v2000_v61 = vsub.f32 %v4865_v52, %v4874_v44 }
 0x2ab   :  { %3613 = vmatpush3.msra.mxu1 %v1366_v4  ;;  %3623 = vmatprep.mubr.f32.mxu0 %v4818_v23  ;;  %5343 = vst [vmem:[#allocation40_spill] sm:$0xff] %v4960_v63  ;;  %v2049_v47 = vsub.f32 %v4949_v40, %v4960_v63 }
 0x2ac   :  { %3614 = vmatprep.subr.mxu1 %v1369_v19  ;;  %3624 = vmatmul.mubr.f32.vlgmr.msra.gmra.mxu0 %v4829_v55  ;;  %v2001_v11 = vand.u32 4294901760, %v2000_v61  ;;  %v1866_v61 = vld [vmem:[#allocation13 + $0x8] sm:$0xff] }
 0x2ad   :  { %3615 = vmatpush3.msra.mxu1 %v1369_v19  ;;  %3633 = vmatprep.subr.mxu0 %v4840_v59  ;;  %v4998_v39 = vand.u32 4294901760, %v1866_v61 }
 0x2ae   :  { %3617 = vmatmul.mubr.f32.vlgmr.msra.gmra.mxu1 %v1416_v58  ;;  %3626 = vmatprep.subr.mxu1 %v1366_v4  ;;  %v4926_v58 = vand.u32 4294901760, %v1872_v14 }
 0x2af   :  { %3627 = vmatpush3.msra.mxu1 %v1366_v4  ;;  %3630 = vmatprep.mubr.f32.mxu1 %v4818_v23  ;;  %v1875_v23 = vld [vmem:[#allocation13 + $0x50] sm:$0xff]  ;;  %v2035_v4 = vsub.f32 %v4924_v30, %v4933_v27  ;;  %v5008_v57 = vsub.f32 %v1866_v61, %v4998_v39 }
 0x2b0   :  { %3628 = vmatprep.subr.mxu1 %v1369_v19  ;;  %3634 = vmatpush3.msra.mxu0 %v4840_v59  ;;  %v4888_v6 = vand.u32 4294901760, %v1875_v23  ;;  %v4936_v24 = vsub.f32 %v1872_v14, %v4926_v58  ;;  %v2064_v14 = vand.u32 4294901760, %v2063_v48 }
 0x2b1   :  { %3629 = vmatpush3.msra.mxu1 %v1369_v19  ;;  %3635 = vmatprep.subr.mxu0 %v4845_v7  ;;  %v4951_v19 = vand.u32 4294901760, %v1870_v2  ;;  %v2036_v18 = vand.u32 4294901760, %v2035_v4 }
 0x2b2   :  { %3631 = vmatmul.mubr.f32.vlgmr.msra.gmra.mxu1 %v4829_v55  ;;  %3636 = vmatpush3.msra.mxu0 %v4845_v7  ;;  %v4897_v50 = vsub.f32 %v1875_v23, %v4888_v6  ;;  %v4903_v55 = vand.u32 4294901760, %v4891_v28  ;;  %v4945_v3 = vand.u32 4294901760, %v4936_v24  ;;  %v2050_v23 = vand.u32 4294901760, %v2049_v47 }
 0x2b3   :  { %3637 = vmatprep.subr.mxu0 %v4855_v16  ;;  %3668 = vmatprep.subr.mxu1 %v1987_v34  ;;  %v4963_v54 = vsub.f32 %v1870_v2, %v4951_v19 }
 0x2b4   :  { %3638 = vmatpush3.msra.mxu0 %v4855_v16  ;;  %3669 = vmatpush3.msra.mxu1 %v1987_v34  ;;  %v4907_v53 = vand.u32 4294901760, %v4897_v50  ;;  %v2014_v56 = vsub.f32 %v4891_v28, %v4903_v55  ;;  %5342 = vst [vmem:[#allocation35_spill] sm:$0xff] %v4945_v3  ;;  %v2042_v22 = vsub.f32 %v4936_v24, %v4945_v3 }
 0x2b5   :  { %3639 = vmatprep.subr.mxu0 %v4867_v20  ;;  %3670 = vmatprep.subr.mxu1 %v1994_v25  ;;  %v4975_v21 = vand.u32 4294901760, %v4963_v54  ;;  %v4982_v34 = vsub.f32 %v1868_v41, %v4969_v15 }
 0x2b6   :  { %3640 = vmatpush3.msra.mxu0 %v4867_v20  ;;  %3671 = vmatpush3.msra.mxu1 %v1994_v25  ;;  %v2021_v49 = vsub.f32 %v4897_v50, %v4907_v53  ;;  %v2015_v12 = vand.u32 4294901760, %v2014_v56  ;;  %v2043_v31 = vand.u32 4294901760, %v2042_v22  ;;  %v1865_v56 = vld [vmem:[#allocation13] sm:$0xff] }
 0x2b7   :  { %3641 = vmatprep.subr.mxu0 %v4880_v37  ;;  %3672 = vmatprep.subr.mxu1 %v2001_v11  ;;  %5344 = vst [vmem:[#allocation38_spill] sm:$0xff] %v4975_v21  ;;  %v2056_v25 = vsub.f32 %v4963_v54, %v4975_v21 }
 0x2b8   :  { %3642 = vmatpush3.msra.mxu0 %v4880_v37  ;;  %3673 = vmatpush3.msra.mxu1 %v2001_v11  ;;  %v2022_v43 = vand.u32 4294901760, %v2021_v49  ;;  %v4993_v11 = vand.u32 4294901760, %v4982_v34 }
 0x2b9   :  { %3643 = vmatprep.subr.mxu0 %v4888_v6  ;;  %3674 = vmatprep.subr.mxu1 %v2008_v32 }
 0x2ba   :  { %3644 = vmatpush3.msra.mxu0 %v4888_v6  ;;  %3675 = vmatpush3.msra.mxu1 %v2008_v32  ;;  %5346 = vst [vmem:[#allocation41_spill] sm:$0xff] %v4993_v11  ;;  %v2057_v32 = vand.u32 4294901760, %v2056_v25  ;;  %v2070_v49 = vsub.f32 %v4982_v34, %v4993_v11 }
 0x2bb   :  { %3645 = vmatprep.subr.mxu0 %v4899_v36  ;;  %3676 = vmatprep.subr.mxu1 %v2015_v12 }
 0x2bc   :  { %3646 = vmatpush3.msra.mxu0 %v4899_v36  ;;  %3677 = vmatpush3.msra.mxu1 %v2015_v12  ;;  %v5005_v12 = vand.u32 4294901760, %v4996_v5  ;;  %v2071_v51 = vand.u32 4294901760, %v2070_v49 }
 0x2bd   :  { %3647 = vmatprep.subr.mxu0 %v4912_v29  ;;  %3678 = vmatprep.subr.mxu1 %v2022_v43 }
 0x2be   :  { %3648 = vmatpush3.msra.mxu0 %v4912_v29  ;;  %3679 = vmatpush3.msra.mxu1 %v2022_v43  ;;  %5347 = vst [vmem:[#allocation44_spill] sm:$0xff] %v5005_v12  ;;  %v5011_v43 = vand.u32 4294901760, %v1865_v56  ;;  %v2077_v2 = vsub.f32 %v4996_v5, %v5005_v12 }
 0x2bf   :  { %3649 = vmatprep.subr.mxu0 %v4926_v58  ;;  %3680 = vmatprep.subr.mxu1 %v2029_v33 }
 0x2c0   :  { %3650 = vmatpush3.msra.mxu0 %v4926_v58  ;;  %3681 = vmatpush3.msra.mxu1 %v2029_v33  ;;  %v5017_v33 = vand.u32 4294901760, %v5008_v57  ;;  %v5021_v4 = vsub.f32 %v1865_v56, %v5011_v43  ;;  %v2078_v60 = vand.u32 4294901760, %v2077_v2 }
 0x2c1   :  { %3651 = vmatprep.subr.mxu0 %v4939_v17  ;;  %3682 = vmatprep.subr.mxu1 %v2036_v18 }
 0x2c2   :  { %3652 = vmatpush3.msra.mxu0 %v4939_v17  ;;  %3683 = vmatpush3.msra.mxu1 %v2036_v18  ;;  %5348 = vst [vmem:[#allocation45_spill] sm:$0xff] %v5017_v33  ;;  %v2084_v18 = vsub.f32 %v5008_v57, %v5017_v33  ;;  %v5028_v22 = vand.u32 4294901760, %v5021_v4 }
 0x2c3   :  { %3653 = vmatprep.subr.mxu0 %v4951_v19  ;;  %3684 = vmatprep.subr.mxu1 %v2043_v31 }
 0x2c4   :  { %3654 = vmatpush3.msra.mxu0 %v4951_v19  ;;  %3685 = vmatpush3.msra.mxu1 %v2043_v31  ;;  %5349 = vst [vmem:[#allocation47_spill] sm:$0xff] %v5028_v22  ;;  %v2085_v41 = vand.u32 4294901760, %v2084_v18  ;;  %v2091_v31 = vsub.f32 %v5021_v4, %v5028_v22 }
 0x2c5   :  { %3655 = vmatprep.subr.mxu0 %v4956_v46  ;;  %3686 = vmatprep.subr.mxu1 %v2050_v23 }
 0x2c6   :  { %3656 = vmatpush3.msra.mxu0 %v4956_v46  ;;  %3687 = vmatpush3.msra.mxu1 %v2050_v23  ;;  %v2092_v47 = vand.u32 4294901760, %v2091_v31 }
 0x2c7   :  { %3657 = vmatprep.subr.mxu0 %v4969_v15  ;;  %3688 = vmatprep.subr.mxu1 %v2057_v32 }
 0x2c8   :  { %3658 = vmatpush3.msra.mxu0 %v4969_v15  ;;  %3689 = vmatpush3.msra.mxu1 %v2057_v32 }
 0x2c9   :  { %3659 = vmatprep.subr.mxu0 %v4984_v45  ;;  %3690 = vmatprep.subr.mxu1 %v2064_v14 }
 0x2ca   :  { %3660 = vmatpush3.msra.mxu0 %v4984_v45  ;;  %3691 = vmatpush3.msra.mxu1 %v2064_v14 }
 0x2cb   :  { %3661 = vmatprep.subr.mxu0 %v4998_v39  ;;  %3692 = vmatprep.subr.mxu1 %v2071_v51 }
 0x2cc   :  { %3662 = vmatpush3.msra.mxu0 %v4998_v39  ;;  %3693 = vmatpush3.msra.mxu1 %v2071_v51 }
 0x2cd   :  { %3663 = vmatprep.subr.mxu0 %v5011_v43  ;;  %3694 = vmatprep.subr.mxu1 %v2078_v60 }
 0x2ce   :  { %3664 = vmatpush3.msra.mxu0 %v5011_v43  ;;  %3695 = vmatpush3.msra.mxu1 %v2078_v60 }
 0x2cf   :  { %3703 = vmatprep.subr.mxu0 %v4843_v8  ;;  %3696 = vmatprep.subr.mxu1 %v2085_v41 }
 0x2d0   :  { %3697 = vmatpush3.msra.mxu1 %v2085_v41 }
 0x2d1   :  { %3698 = vmatprep.subr.mxu1 %v2092_v47 }
 0x2d2   :  { %3699 = vmatpush3.msra.mxu1 %v2092_v47 }
 0x2d3   :  { %3738 = vmatprep.subr.mxu1 %v4840_v59 }
 0x361   :  { %v3597_v62 = vpop.f32.mrf.mxu0 }
 0x363   :  { %v1410_v23 = vpop.f32.mrf.mxu0 }
 0x366   :  { %v3611_v25 = vpop.f32.mrf.mxu0 }
 0x368   :  { %v1583_v32 = vpop.f32.mrf.mxu0 }
 0x369   :  { %v3604_v61 = vpop.f32.mrf.mxu1 }
 0x36a   :  { %v1508_v48 = vadd.f32 %v3604_v61, %v3597_v62 }
 0x36b   :  { %v1501_v56 = vpop.f32.mrf.mxu1 }
 0x36c   :  { %v1591_v14 = vadd.f32 %v3611_v25, %v1508_v48  ;;  %v1502_v49 = vadd.f32 %v1501_v56, %v1410_v23  ;;  %v3625_v18 = vpop.f32.mrf.mxu0  ;;  %v1854_v56 = vstv %s3116_s1 }
 0x36e   :  { %v1584_v51 = vadd.f32 %v1583_v32, %v1502_v49  ;;  %v3618_v2 = vpop.f32.mrf.mxu1  ;;  %v1750_v33 = vpop.f32.mrf.mxu0 }
 0x36f   :  { %v1674_v60 = vadd.f32 %v3618_v2, %v1591_v14 }
 0x370   :  { %v1665_v22 = vpop.f32.mrf.mxu1 }
 0x371   :  { %v1757_v31 = vadd.f32 %v3625_v18, %v1674_v60  ;;  %v1666_v41 = vadd.f32 %v1665_v22, %v1584_v51  ;;  %v1850_v22 = vstv %s3115_s26 }
 0x372   :  { %v3632_v47 = vpop.f32.mrf.mxu1 }
 0x373   :  { %v1751_v12 = vadd.f32 %v1750_v33, %v1666_v41  ;;  %v1836_v11 = vadd.f32 %v3632_v47, %v1757_v31 }
 0x374   :  { %v1829_v26 = vpop.f32.mrf.mxu1 }
 0x375   :  { %v1840_v21 = vmul.f32 %v1836_v11, %v1836_v11  ;;  %v1830_v63 = vadd.f32 %v1829_v26, %v1751_v12  ;;  %v1860_v26 = vstv %s1859_s0 }
 0x377   :  { %v1842_v3 = vsub.f32 0.0, %v1840_v21  ;;  %v1839_v62 = vmul.f32 %v1830_v63, %v1830_v63 }
 0x379   :  { %v1844_v61 = vmul.f32 0.5, %v1842_v3  ;;  %v1841_v27 = vsub.f32 0.0, %v1839_v62 }
 0x37b   :  { %v1847_v25 = vmul.f32 1.442695, %v1844_v61  ;;  %v1843_v23 = vmul.f32 0.5, %v1841_v27 }
 0x37d   :  { %3899 = vpow2.f32 %v1847_v25  ;;  %v1845_v48 = vmul.f32 1.442695, %v1843_v23 }
 0x37f   :  { %3901 = vpow2.f32 %v1845_v48 }
 0x38a   :  { %v3900_v32 = vpop.eup %3899 }
 0x38b   :  { %v1852_v33 = vmul.f32 %v3900_v32, %v1850_v22 }
 0x38c   :  { %v3902_v14 = vpop.eup %3901 }
 0x38d   :  { %v1856_v49 = vadd.f32 %v1854_v56, %v1852_v33  ;;  %v1851_v51 = vmul.f32 %v3902_v14, %v1850_v22 }
 0x38f   :  { %v1858_v21 = vmul.f32 %v3900_v32, %v1856_v49  ;;  %v1855_v12 = vadd.f32 %v1854_v56, %v1851_v51 }
 0x391   :  { %v1862_v3 = vadd.f32 %v1860_v26, %v1858_v21  ;;  %v1857_v2 = vmul.f32 %v3902_v14, %v1855_v12 }
 0x393   :  { %v1864_v18 = vmul.f32 %v1862_v3, %v1836_v11  ;;  %v1861_v27 = vadd.f32 %v1860_v26, %v1857_v2 }
 0x395   :  { %v5034_v60 = vand.u32 4294901760, %v1864_v18  ;;  %v1863_v31 = vmul.f32 %v1861_v27, %v1830_v63 }
 0x397   :  { %v5037_v41 = vsub.f32 %v1864_v18, %v5034_v60  ;;  %v5039_v47 = vand.u32 4294901760, %v1863_v31 }
 0x399   :  { %v1974_v62 = vand.u32 4294901760, %v5037_v41  ;;  %v1963_v61 = vsub.f32 %v1863_v31, %v5039_v47  ;;  %3700 = vmatprep.mubr.f32.mxu1 %v5039_v47 }
 0x39a   :  { %3701 = vmatmul.mubr.f32.vlgmr.msra.gmra.mxu1 %v5034_v60 }
 0x39b   :  { %3739 = vmatpush3.msra.mxu1 %v4840_v59  ;;  %v1964_v11 = vand.u32 4294901760, %v1963_v61  ;;  %v1975_v63 = vsub.f32 %v5037_v41, %v1974_v62 }
 0x39c   :  { %3740 = vmatprep.subr.mxu1 %v4845_v7 }
 0x39d   :  { %3741 = vmatpush3.msra.mxu1 %v4845_v7  ;;  %3770 = vmatprep.mubr.f32.mxu1 %v1964_v11  ;;  %v1965_v25 = vsub.f32 %v1963_v61, %v1964_v11  ;;  %v1976_v48 = vand.u32 4294901760, %v1975_v63 }
 0x39e   :  { %3742 = vmatprep.subr.mxu1 %v4855_v16 }
 0x39f   :  { %3743 = vmatpush3.msra.mxu1 %v4855_v16  ;;  %v1966_v23 = vand.u32 4294901760, %v1965_v25 }
 0x3a0   :  { %3744 = vmatprep.subr.mxu1 %v4867_v20 }
 0x3a1   :  { %3745 = vmatpush3.msra.mxu1 %v4867_v20  ;;  %3665 = vmatprep.mubr.f32.mxu0 %v1966_v23 }
 0x3a2   :  { %3746 = vmatprep.subr.mxu1 %v4880_v37  ;;  %3666 = vmatmul.mubr.f32.vlgmr.msra.gmra.mxu0 %v1976_v48 }
 0x3a3   :  { %3704 = vmatpush3.msra.mxu0 %v4843_v8  ;;  %3747 = vmatpush3.msra.mxu1 %v4880_v37  ;;  %v5351_v8 = vld [vmem:[#allocation35_spill] sm:$0xff] }
 0x3a4   :  { %3705 = vmatprep.subr.mxu0 %v4853_v35  ;;  %3735 = vmatprep.mubr.f32.mxu0 %v1963_v61 }
 0x3a5   :  { %3748 = vmatprep.subr.mxu1 %v4888_v6  ;;  %3706 = vmatpush3.msra.mxu0 %v4853_v35  ;;  %v5354_v35 = vld [vmem:[#allocation42_spill] sm:$0xff] }
 0x3a6   :  { %3749 = vmatpush3.msra.mxu1 %v4888_v6  ;;  %3707 = vmatprep.subr.mxu0 %v4865_v52 }
 0x3a7   :  { %3750 = vmatprep.subr.mxu1 %v4899_v36  ;;  %3708 = vmatpush3.msra.mxu0 %v4865_v52  ;;  %v5357_v52 = vld [vmem:[#allocation45_spill] sm:$0xff] }
 0x3a8   :  { %3751 = vmatpush3.msra.mxu1 %v4899_v36  ;;  %3709 = vmatprep.subr.mxu0 %v4877_v0 }
 0x3a9   :  { %3752 = vmatprep.subr.mxu1 %v4912_v29  ;;  %3710 = vmatpush3.msra.mxu0 %v4877_v0 }
 0x3aa   :  { %3753 = vmatpush3.msra.mxu1 %v4912_v29  ;;  %3711 = vmatprep.subr.mxu0 %v4891_v28 }
 0x3ab   :  { %3754 = vmatprep.subr.mxu1 %v4926_v58  ;;  %3712 = vmatpush3.msra.mxu0 %v4891_v28 }
 0x3ac   :  { %3755 = vmatpush3.msra.mxu1 %v4926_v58  ;;  %3713 = vmatprep.subr.mxu0 %v4897_v50 }
 0x3ad   :  { %3756 = vmatprep.subr.mxu1 %v4939_v17  ;;  %3714 = vmatpush3.msra.mxu0 %v4897_v50 }
 0x3ae   :  { %3757 = vmatpush3.msra.mxu1 %v4939_v17  ;;  %3715 = vmatprep.subr.mxu0 %v4910_v10 }
 0x3af   :  { %3758 = vmatprep.subr.mxu1 %v4951_v19  ;;  %3716 = vmatpush3.msra.mxu0 %v4910_v10 }
 0x3b0   :  { %3759 = vmatpush3.msra.mxu1 %v4951_v19  ;;  %3717 = vmatprep.subr.mxu0 %v4924_v30 }
 0x3b1   :  { %3760 = vmatprep.subr.mxu1 %v4956_v46  ;;  %3718 = vmatpush3.msra.mxu0 %v4924_v30 }
 0x3b2   :  { %3761 = vmatpush3.msra.mxu1 %v4956_v46  ;;  %3719 = vmatprep.subr.mxu0 %v4936_v24 }
 0x3b3   :  { %3762 = vmatprep.subr.mxu1 %v4969_v15  ;;  %3720 = vmatpush3.msra.mxu0 %v4936_v24 }
 0x3b4   :  { %3763 = vmatpush3.msra.mxu1 %v4969_v15  ;;  %3721 = vmatprep.subr.mxu0 %v4949_v40 }
 0x3b5   :  { %3764 = vmatprep.subr.mxu1 %v4984_v45  ;;  %3722 = vmatpush3.msra.mxu0 %v4949_v40 }
 0x3b6   :  { %3765 = vmatpush3.msra.mxu1 %v4984_v45  ;;  %3723 = vmatprep.subr.mxu0 %v4963_v54 }
 0x3b7   :  { %3766 = vmatprep.subr.mxu1 %v4998_v39  ;;  %3724 = vmatpush3.msra.mxu0 %v4963_v54 }
 0x3b8   :  { %3767 = vmatpush3.msra.mxu1 %v4998_v39  ;;  %3725 = vmatprep.subr.mxu0 %v4967_v38 }
 0x3b9   :  { %3768 = vmatprep.subr.mxu1 %v5011_v43  ;;  %3726 = vmatpush3.msra.mxu0 %v4967_v38 }
 0x3ba   :  { %3769 = vmatpush3.msra.mxu1 %v5011_v43  ;;  %3727 = vmatprep.subr.mxu0 %v4982_v34 }
 0x3bb   :  { %3771 = vmatmul.mubr.f32.vlgmr.msra.gmra.mxu1 %v1974_v62  ;;  %3808 = vmatprep.subr.mxu1 %v4840_v59 }
 0x3bc   :  { %3728 = vmatpush3.msra.mxu0 %v4982_v34  ;;  %3809 = vmatpush3.msra.mxu1 %v4840_v59  ;;  %v5350_v59 = vld [vmem:[#allocation39_spill] sm:$0xff] }
 0x3bd   :  { %3840 = vmatprep.mubr.f32.mxu1 %v5039_v47  ;;  %3729 = vmatprep.subr.mxu0 %v4996_v5 }
 0x3be   :  { %3810 = vmatprep.subr.mxu1 %v4845_v7  ;;  %3730 = vmatpush3.msra.mxu0 %v4996_v5 }
 0x3bf   :  { %3811 = vmatpush3.msra.mxu1 %v4845_v7  ;;  %3731 = vmatprep.subr.mxu0 %v5008_v57  ;;  %v5352_v7 = vld [vmem:[#allocation40_spill] sm:$0xff] }
 0x3c0   :  { %3812 = vmatprep.subr.mxu1 %v4855_v16  ;;  %3732 = vmatpush3.msra.mxu0 %v5008_v57 }
 0x3c1   :  { %3813 = vmatpush3.msra.mxu1 %v4855_v16  ;;  %3733 = vmatprep.subr.mxu0 %v5021_v4  ;;  %v5355_v16 = vld [vmem:[#allocation41_spill] sm:$0xff] }
 0x3c2   :  { %3814 = vmatprep.subr.mxu1 %v4867_v20  ;;  %3734 = vmatpush3.msra.mxu0 %v5021_v4 }
 0x3c3   :  { %3815 = vmatpush3.msra.mxu1 %v4867_v20  ;;  %3736 = vmatmul.mubr.f32.vlgmr.msra.gmra.mxu0 %v5037_v41  ;;  %v5358_v20 = vld [vmem:[#allocation47_spill] sm:$0xff] }
 0x3c4   :  { %3773 = vmatprep.subr.mxu0 %v4850_v1  ;;  %3816 = vmatprep.subr.mxu1 %v4880_v37 }
 0x3c5   :  { %3774 = vmatpush3.msra.mxu0 %v4850_v1  ;;  %3805 = vmatprep.mubr.f32.mxu0 %v5039_v47  ;;  %v5353_v1 = vld [vmem:[#allocation38_spill] sm:$0xff] }
 0x3c6   :  { %3817 = vmatpush3.msra.mxu1 %v4880_v37  ;;  %3775 = vmatprep.subr.mxu0 %v4862_v9 }
 0x3c7   :  { %3818 = vmatprep.subr.mxu1 %v4888_v6  ;;  %3776 = vmatpush3.msra.mxu0 %v4862_v9  ;;  %v5356_v9 = vld [vmem:[#allocation44_spill] sm:$0xff] }
 0x3c8   :  { %3819 = vmatpush3.msra.mxu1 %v4888_v6  ;;  %3777 = vmatprep.subr.mxu0 %v4874_v44 }
 0x3c9   :  { %3820 = vmatprep.subr.mxu1 %v4899_v36  ;;  %3778 = vmatpush3.msra.mxu0 %v4874_v44  ;;  %v2565_v44 = vld [vmem:[#allocation16] sm:$0xff] }
 0x3ca   :  { %3821 = vmatpush3.msra.mxu1 %v4899_v36  ;;  %3779 = vmatprep.subr.mxu0 %v4886_v42  ;;  %v2568_v0 = vsel %vm1330_vm8, %v2565_v44, 0 }
 0x3cb   :  { %3822 = vmatprep.subr.mxu1 %v4912_v29  ;;  %3780 = vmatpush3.msra.mxu0 %v4886_v42  ;;  %v5182_v37 = vand.u32 4294901760, %v2568_v0 }
 0x3cc   :  { %3823 = vmatpush3.msra.mxu1 %v4912_v29  ;;  %3781 = vmatprep.subr.mxu0 %v4903_v55 }
 0x3cd   :  { %3824 = vmatprep.subr.mxu1 %v4926_v58  ;;  %3782 = vmatpush3.msra.mxu0 %v4903_v55  ;;  %v5185_v42 = vsub.f32 %v2568_v0, %v5182_v37  ;;  %v2566_v55 = vld [vmem:[#allocation16 + $0x8] sm:$0xff] }
 0x3ce   :  { %3825 = vmatpush3.msra.mxu1 %v4926_v58  ;;  %3783 = vmatprep.subr.mxu0 %v4907_v53  ;;  %v2571_v29 = vsel %vm1330_vm8, %v2566_v55, 0 }
 0x3cf   :  { %3826 = vmatprep.subr.mxu1 %v4939_v17  ;;  %3784 = vmatpush3.msra.mxu0 %v4907_v53  ;;  %v2642_v6 = vand.u32 4294901760, %v5185_v42  ;;  %v5193_v30 = vand.u32 4294901760, %v2571_v29 }
 0x3d0   :  { %3827 = vmatpush3.msra.mxu1 %v4939_v17  ;;  %3785 = vmatprep.subr.mxu0 %v4921_v13 }
 0x3d1   :  { %3828 = vmatprep.subr.mxu1 %v4951_v19  ;;  %3786 = vmatpush3.msra.mxu0 %v4921_v13  ;;  %v2643_v28 = vsub.f32 %v5185_v42, %v2642_v6  ;;  %v2651_v54 = vsub.f32 %v2571_v29, %v5193_v30 }
 0x3d2   :  { %3829 = vmatpush3.msra.mxu1 %v4951_v19  ;;  %3787 = vmatprep.subr.mxu0 %v5350_v59 }
 0x3d3   :  { %3830 = vmatprep.subr.mxu1 %v4956_v46  ;;  %3788 = vmatpush3.msra.mxu0 %v5350_v59  ;;  %v2644_v50 = vand.u32 4294901760, %v2643_v28 }
 0x3d4   :  { %3831 = vmatpush3.msra.mxu1 %v4956_v46  ;;  %3789 = vmatprep.subr.mxu0 %v5351_v8 }
 0x3d5   :  { %3832 = vmatprep.subr.mxu1 %v4969_v15  ;;  %3790 = vmatpush3.msra.mxu0 %v5351_v8 }
 0x3d6   :  { %3833 = vmatpush3.msra.mxu1 %v4969_v15  ;;  %3791 = vmatprep.subr.mxu0 %v5352_v7 }
 0x3d7   :  { %3834 = vmatprep.subr.mxu1 %v4984_v45  ;;  %3792 = vmatpush3.msra.mxu0 %v5352_v7 }
 0x3d8   :  { %3835 = vmatpush3.msra.mxu1 %v4984_v45  ;;  %3793 = vmatprep.subr.mxu0 %v5353_v1  ;;  %v2652_v45 = vand.u32 4294901760, %v2651_v54 }
 0x3d9   :  { %3836 = vmatprep.subr.mxu1 %v4998_v39  ;;  %3794 = vmatpush3.msra.mxu0 %v5353_v1 }
 0x3da   :  { %3837 = vmatpush3.msra.mxu1 %v4998_v39  ;;  %3795 = vmatprep.subr.mxu0 %v5354_v35  ;;  %v2653_v56 = vsub.f32 %v2651_v54, %v2652_v45 }
 0x3db   :  { %3838 = vmatprep.subr.mxu1 %v5011_v43  ;;  %3796 = vmatpush3.msra.mxu0 %v5354_v35 }
 0x3dc   :  { %3839 = vmatpush3.msra.mxu1 %v5011_v43  ;;  %3797 = vmatprep.subr.mxu0 %v5355_v16  ;;  %v2654_v21 = vand.u32 4294901760, %v2653_v56 }
 0x3dd   :  { %3841 = vmatmul.mubr.f32.vlgmr.msra.gmra.mxu1 %v5034_v60  ;;  %3798 = vmatpush3.msra.mxu0 %v5355_v16 }
 0x3de   :  { %3799 = vmatprep.subr.mxu0 %v5356_v9  ;;  %3854 = vmatprep.mubr.f32.mxu1 %v5182_v37 }
 0x3df   :  { %3800 = vmatpush3.msra.mxu0 %v5356_v9 }
 0x3e0   :  { %3801 = vmatprep.subr.mxu0 %v5357_v52 }
 0x3e1   :  { %3802 = vmatpush3.msra.mxu0 %v5357_v52 }
 0x3e2   :  { %3803 = vmatprep.subr.mxu0 %v5358_v20 }
 0x3e3   :  { %3804 = vmatpush3.msra.mxu0 %v5358_v20 }
 0x3e4   :  { %3806 = vmatmul.mubr.f32.vlgmr.msra.gmra.mxu0 %v5034_v60 }
 0x3e5   :  { %3847 = vmatprep.mubr.f32.mxu0 %v2644_v50 }
 0x45a   :  { %v3702_v53 = vpop.f32.mrf.mxu1 }
 0x45c   :  { %v2129_v58 = vpop.f32.mrf.mxu1 }
 0x462   :  { %v3667_v36 = vpop.f32.mrf.mxu0 }
 0x463   :  { %v2136_v24 = vadd.f32 %v3702_v53, %v3667_v36 }
 0x464   :  { %v1968_v10 = vpop.f32.mrf.mxu0 }
 0x465   :  { %v2130_v19 = vadd.f32 %v2129_v58, %v1968_v10 }
 0x47b   :  { %v3772_v17 = vpop.f32.mrf.mxu1 }
 0x47d   :  { %v2335_v15 = vpop.f32.mrf.mxu1 }
 0x483   :  { %v3737_v13 = vpop.f32.mrf.mxu0 }
 0x484   :  { %v2247_v46 = vadd.f32 %v3737_v13, %v2136_v24 }
 0x485   :  { %v2239_v40 = vpop.f32.mrf.mxu0 }
 0x486   :  { %v2240_v38 = vadd.f32 %v2239_v40, %v2130_v19  ;;  %v2344_v34 = vadd.f32 %v3772_v17, %v2247_v46 }
 0x488   :  { %v2336_v43 = vadd.f32 %v2335_v15, %v2240_v38 }
 0x49d   :  { %v3842_v5 = vpop.f32.mrf.mxu1 }
 0x49f   :  { %v2555_v33 = vpop.f32.mrf.mxu1 }
 0x4a4   :  { %v3807_v39 = vpop.f32.mrf.mxu0 }
 0x4a5   :  { %v2469_v57 = vadd.f32 %v3807_v39, %v2344_v34 }
 0x4a6   :  { %v2462_v4 = vpop.f32.mrf.mxu0 }
 0x4a7   :  { %v2562_v22 = vadd.f32 %v3842_v5, %v2469_v57  ;;  %v2463_v32 = vadd.f32 %v2462_v4, %v2336_v43 }
 0x4a9   :  { %v2602_v14 = vand.u32 4294901760, %v2562_v22  ;;  %v2556_v49 = vadd.f32 %v2555_v33, %v2463_v32 }
 0x4ab   :  { %v2690_v51 = vsub.f32 %v2562_v22, %v2602_v14  ;;  %v2605_v26 = vand.u32 4294901760, %v2556_v49  ;;  %3843 = vmatprep.subr.mxu0 %v2602_v14 }
 0x4ac   :  { %3844 = vmatpush3.msra.mxu0 %v2602_v14 }
 0x4ad   :  { %v2697_v12 = vsub.f32 %v2556_v49, %v2605_v26  ;;  %3845 = vmatprep.subr.mxu0 %v2605_v26  ;;  %v2691_v3 = vand.u32 4294901760, %v2690_v51 }
 0x4ae   :  { %3846 = vmatpush3.msra.mxu0 %v2605_v26 }
 0x4af   :  { %3857 = vmatprep.subr.mxu0 %v2690_v51  ;;  %3848 = vmatmul.mubr.f32.vlgmr.msra.gmra.mxu0 %v2654_v21  ;;  %v2692_v2 = vsub.f32 %v2690_v51, %v2691_v3  ;;  %v2698_v18 = vand.u32 4294901760, %v2697_v12 }
 0x4b0   :  { %3858 = vmatpush3.msra.mxu0 %v2690_v51  ;;  %3861 = vmatprep.mubr.f32.mxu0 %v5185_v42 }
 0x4b1   :  { %3859 = vmatprep.subr.mxu0 %v2697_v12  ;;  %v2693_v27 = vand.u32 4294901760, %v2692_v2  ;;  %v2699_v60 = vsub.f32 %v2697_v12, %v2698_v18 }
 0x4b2   :  { %3860 = vmatpush3.msra.mxu0 %v2697_v12 }
 0x4b3   :  { %3850 = vmatprep.subr.mxu1 %v2693_v27  ;;  %3871 = vmatprep.subr.mxu0 %v2691_v3  ;;  %v2700_v31 = vand.u32 4294901760, %v2699_v60 }
 0x4b4   :  { %3851 = vmatpush3.msra.mxu1 %v2693_v27  ;;  %3862 = vmatmul.mubr.f32.vlgmr.msra.gmra.mxu0 %v2651_v54 }
 0x4b5   :  { %3872 = vmatpush3.msra.mxu0 %v2691_v3  ;;  %3852 = vmatprep.subr.mxu1 %v2700_v31 }
 0x4b6   :  { %3873 = vmatprep.subr.mxu0 %v2698_v18  ;;  %3853 = vmatpush3.msra.mxu1 %v2700_v31 }
 0x4b7   :  { %3874 = vmatpush3.msra.mxu0 %v2698_v18  ;;  %3855 = vmatmul.mubr.f32.vlgmr.msra.gmra.mxu1 %v5193_v30 }
 0x4b8   :  { %3864 = vmatprep.subr.mxu1 %v2602_v14  ;;  %3868 = vmatprep.mubr.f32.mxu1 %v2642_v6 }
 0x4b9   :  { %3865 = vmatpush3.msra.mxu1 %v2602_v14  ;;  %3875 = vmatprep.mubr.f32.mxu0 %v5182_v37 }
 0x4ba   :  { %3866 = vmatprep.subr.mxu1 %v2605_v26  ;;  %3876 = vmatmul.mubr.f32.vlgmr.msra.gmra.mxu0 %v5193_v30 }
 0x4bb   :  { %3867 = vmatpush3.msra.mxu1 %v2605_v26 }
 0x4bc   :  { %3869 = vmatmul.mubr.f32.vlgmr.msra.gmra.mxu1 %v2652_v45  ;;  %3878 = vmatprep.subr.mxu1 %v2602_v14 }
 0x4bd   :  { %3879 = vmatpush3.msra.mxu1 %v2602_v14  ;;  %3882 = vmatprep.mubr.f32.mxu1 %v5182_v37 }
 0x4be   :  { %3880 = vmatprep.subr.mxu1 %v2605_v26 }
 0x4bf   :  { %3881 = vmatpush3.msra.mxu1 %v2605_v26 }
 0x4c0   :  { %3883 = vmatmul.mubr.f32.vlgmr.msra.gmra.mxu1 %v5193_v30 }
 0x56f   :  { %v3849_v41 = vpop.f32.mrf.mxu0 }
 0x571   :  { %v2646_v47 = vpop.f32.mrf.mxu0 }
 0x574   :  { %v3863_v62 = vpop.f32.mrf.mxu0 }
 0x576   :  { %v2819_v63 = vpop.f32.mrf.mxu0 }
 0x577   :  { %v3856_v61 = vpop.f32.mrf.mxu1 }
 0x578   :  { %v2744_v11 = vadd.f32 %v3856_v61, %v3849_v41 }
 0x579   :  { %v2737_v25 = vpop.f32.mrf.mxu1 }
 0x57a   :  { %v2827_v23 = vadd.f32 %v3863_v62, %v2744_v11  ;;  %v2738_v48 = vadd.f32 %v2737_v25, %v2646_v47  ;;  %v3877_v7 = vpop.f32.mrf.mxu0 }
 0x57c   :  { %v2820_v59 = vadd.f32 %v2819_v63, %v2738_v48  ;;  %v3870_v8 = vpop.f32.mrf.mxu1  ;;  %v2986_v52 = vpop.f32.mrf.mxu0 }
 0x57d   :  { %v2910_v1 = vadd.f32 %v3870_v8, %v2827_v23 }
 0x57e   :  { %v2901_v35 = vpop.f32.mrf.mxu1 }
 0x57f   :  { %v2993_v16 = vadd.f32 %v3877_v7, %v2910_v1  ;;  %v2902_v9 = vadd.f32 %v2901_v35, %v2820_v59 }
 0x580   :  { %v3884_v20 = vpop.f32.mrf.mxu1 }
 0x581   :  { %v2987_v44 = vadd.f32 %v2986_v52, %v2902_v9  ;;  %v3072_v0 = vadd.f32 %v3884_v20, %v2993_v16 }
 0x582   :  { %v3065_v37 = vpop.f32.mrf.mxu1 }
 0x583   :  { %3076 = vst [vmem:[#allocation18 + $0x8] sm:$0xff] %v3072_v0  ;;  %v3066_v42 = vadd.f32 %v3065_v37, %v2987_v44 }
 0x585   :  { %3075 = vst [vmem:[#allocation18] sm:$0xff] %v3066_v42 }
 0x586   :  { %4054 = shalt.err (!%p4051_p11)
}
 0x587   :  { %3088 = dma.vmem_to_hbm [thread:$0]  %s3083_s28, 256, %s5218_s8, [#allocation5], %s4079_s10, %s4079_s10, %s4080_s11  }
 0x588   :  { %4075 = dma.done.wait [#allocation5], 256  }
 0x589   :  { %4076 = vsyncadd [#allocation5], 4294967040 }
 0x58a   :  { %3092 = vsyncpa [#allocation4], 1 }
 0x58b   :  { %3093 = vsyncpa [#allocation11], 1 }
 0x58c   :  { %3094 = vsyncpa [#allocation14], 1 }
 0x58d   :  { %3095 = vsyncpa [#allocation17], 1 }
 0x58e   :  { %3096 = vsyncpa [#allocation5], 1 }
 0x58f   :  { %3097 = vsyncpa [#allocation6], 1 }
 0x590   :  { %3098 = vsyncpa [#allocation7], 1 }

</bundles_post_ra>
